<compile_context>
chip_gen: v6e
topology: v6e:2x2x1
jax: 0.10.0
libtpu: 0.0.40
codegen_flags: <defaults>
</compile_context>

<pallas_src>
import jax
import jax.numpy as jnp
from jax import lax
from jax.experimental import pallas as pl
from jax.experimental.pallas import tpu as pltpu


def _round_up(x, m):
    return (x + m - 1) // m * m


def _vmem_capacity_bytes():
    try:
        info = pltpu.get_tpu_info()
        for name in ("vmem_capacity_bytes", "vmem_size_bytes", "vmem_bytes"):
            v = getattr(info, name, None)
            if v:
                return int(v)
    except Exception:
        pass
    return 64 * 1024 * 1024  # conservative default (v7x per-TC VMEM)


def _num_tensorcores():
    try:
        info = pltpu.get_tpu_info()
        for name in ("num_cores", "num_tensorcores", "tensorcore_count",
                     "cores_per_chip", "num_cores_per_chip"):
            v = getattr(info, name, None)
            if v:
                return int(v)
    except Exception:
        pass
    return 1  # safe default: v5e/v6e have a single TensorCore


def _vmem_budget_bytes(T, BB, E_p, H_p, O_p, weight_bufs):
    bf16, f32 = 2, 4
    weights = (E_p * H_p + H_p * H_p + H_p * O_p) * bf16 * weight_bufs
    biases = (H_p + O_p) * f32 * weight_bufs
    h0 = BB * H_p * f32 * 2
    emb = T * BB * E_p * bf16 * 2            # double-buffered input chunk
    out = T * BB * O_p * f32 * 2             # double-buffered output chunk
    hfin = BB * H_p * f32 * 2
    scratch = BB * H_p * f32 + T * BB * H_p * (bf16 + f32)
    return weights + biases + h0 + emb + out + hfin + scratch


def _make_rnn_chunk_kernel(seq_len, needs_mask):
    """Kernel processing one (batch_block, time_chunk) tile of the recurrence."""

    def kernel(h0_ref, emb_ref, wih_ref, whh_ref, brnn_ref, wfc_ref, bfc_ref,
               out_ref, hfinal_ref, h_scratch, hseq_scratch, pre_scratch):
        c = pl.program_id(1)                    # time-chunk index (serial axis)
        Tc, B, E = emb_ref.shape                # (T, batch_block, emb_p)
        O = out_ref.shape[2]

        # Initialize the carried hidden state at the start of each sequence.
        @pl.when(c == 0)
        def _():
            h_scratch[...] = h0_ref[...]

        # Hoisted input projection (+ fused b_ih + b_hh): one big MXU matmul per chunk.
        x = emb_ref[...].reshape(Tc * B, E)                       # bf16 operand
        pre_scratch[...] = (
            jnp.dot(x, wih_ref[...], preferred_element_type=jnp.float32)
            + brnn_ref[...])

        whh = whh_ref[...]                                        # bf16, chunk-resident

        # Serial recurrence: only h @ W_hh^T + tanh on the critical path.
        def step(i, h):
            off = pl.multiple_of(i * B, 8)
            p = pre_scratch[pl.ds(off, B), :]
            h_new = jnp.tanh(
                p + jnp.dot(h.astype(jnp.bfloat16), whh,
                            preferred_element_type=jnp.float32))
            if needs_mask:
                # Only the (possibly partial) last chunk pays this single vselect.
                h_new = jnp.where((c * Tc + i) < seq_len, h_new, h)
            hseq_scratch[pl.ds(off, B), :] = h_new.astype(hseq_scratch.dtype)
            return h_new

        h = lax.fori_loop(0, Tc, step, h_scratch[...], unroll=min(Tc, 8))
        h_scratch[...] = h

        # fc projection out of the recurrence: one lane-dense matmul per chunk.
        logits = (jnp.dot(hseq_scratch[...], wfc_ref[...],
                          preferred_element_type=jnp.float32)
                  + bfc_ref[...])
        out_ref[...] = logits.reshape(Tc, B, O).astype(out_ref.dtype)

        @pl.when(c == pl.num_programs(1) - 1)
        def _():
            hfinal_ref[...] = h.astype(hfinal_ref.dtype)

    return kernel


def _call_rnn_pallas(h0, emb, wih_t, whh_t, brnn, wfc_t, bfc, *,
                     seq_len, T, nc, nb, BB, E_p, H_p, O_p,
                     needs_mask, single_buffer_weights):
    S_p = nc * T
    B_p = nb * BB

    w_mode = {}
    if single_buffer_weights and hasattr(pl, "Buffered"):
        # Grid-invariant operands: no re-DMA ever happens, so 1 buffer suffices.
        w_mode = dict(pipeline_mode=pl.Buffered(1))

    in_specs = [
        pl.BlockSpec((BB, H_p), lambda b, c: (b, 0)),                  # h0
        pl.BlockSpec((T, BB, E_p), lambda b, c: (c, b, 0)),            # emb chunk
        pl.BlockSpec((E_p, H_p), lambda b, c: (0, 0), **w_mode),       # W_ih^T
        pl.BlockSpec((H_p, H_p), lambda b, c: (0, 0), **w_mode),       # W_hh^T
        pl.BlockSpec((1, H_p), lambda b, c: (0, 0), **w_mode),         # b_ih + b_hh
        pl.BlockSpec((H_p, O_p), lambda b, c: (0, 0), **w_mode),       # W_fc^T
        pl.BlockSpec((1, O_p), lambda b, c: (0, 0), **w_mode),         # b_fc
    ]
    out_specs = [
        pl.BlockSpec((T, BB, O_p), lambda b, c: (c, b, 0)),            # logits chunk
        pl.BlockSpec((BB, H_p), lambda b, c: (b, 0)),                  # final hidden
    ]
    scratch_shapes = [
        pltpu.VMEM((BB, H_p), jnp.float32),        # carried hidden state (f32)
        pltpu.VMEM((T * BB, H_p), jnp.bfloat16),   # chunk's staged hidden states
        pltpu.VMEM((T * BB, H_p), jnp.float32),    # hoisted input projection
    ]

    weight_bufs = 1 if w_mode else 2
    cap = _vmem_capacity_bytes()
    budget = _vmem_budget_bytes(T, BB, E_p, H_p, O_p, weight_bufs)
    vmem_limit = min(int(cap * 0.95),
                     max(16 * 1024 * 1024, int(budget * 1.3) + (2 << 20)))

    grid_spec = pltpu.PrefetchScalarGridSpec(
        num_scalar_prefetch=0,
        grid=(nb, nc),
        in_specs=in_specs,
        out_specs=out_specs,
        scratch_shapes=scratch_shapes,
    )

    out_shape = (
        jax.ShapeDtypeStruct((S_p, B_p, O_p), jnp.float32),
        jax.ShapeDtypeStruct((B_p, H_p), jnp.float32),
    )

    return pl.pallas_call(
        _make_rnn_chunk_kernel(seq_len, needs_mask),
        out_shape=out_shape,
        grid_spec=grid_spec,
        compiler_params=pltpu.CompilerParams(
            dimension_semantics=("parallel", "arbitrary"),   # time recurrence is serial
            vmem_limit_bytes=vmem_limit),
    )(h0, emb, wih_t, whh_t, brnn, wfc_t, bfc)


def simple_seq2seq_rnn_forward(x, params, hidden=None, time_chunk=64):
    """x: (seq_len, batch) int32 token indices.
    Returns (outputs (seq_len, batch, output_size) f32, final_hidden (batch, hidden) f32)."""
    emb_table, w_ih, b_ih, w_hh, b_hh, w_fc, b_fc = (
        params["embedding"], params["w_ih"], params["b_ih"],
        params["w_hh"], params["b_hh"], params["w_fc"], params["b_fc"])

    seq_len, batch = x.shape
    emb_dim = emb_table.shape[1]
    hidden_size = w_hh.shape[0]
    output_size = w_fc.shape[0]

    if hidden is None:
        hidden = jnp.zeros((batch, hidden_size), jnp.float32)

    # --- TPU-friendly padded sizes -------------------------------------------
    B_p = _round_up(batch, 8)            # sublanes
    E_p = _round_up(emb_dim, 128)        # lanes
    H_p = _round_up(hidden_size, 128)
    O_p = _round_up(output_size, 128)

    # --- Batch-block split only when there are >= 2 TensorCores (v7x). -------
    nb = 2 if (_num_tensorcores() >= 2 and B_p % 16 == 0) else 1
    BB = B_p // nb

    # --- Time chunk: prefer a divisor of seq_len (no per-step mask), then shrink
    #     until the VMEM budget fits the chip.
    T = max(1, min(time_chunk, seq_len))
    for d in range(T, 0, -1):
        if seq_len % d == 0:
            if 2 * d >= T:
                T = d
            break
    cap = _vmem_capacity_bytes()
    while _vmem_budget_bytes(T, BB, E_p, H_p, O_p, 1) > int(0.75 * cap) and T > 8:
        T = max(8, (T + 1) // 2)
    needs_mask = (seq_len % T) != 0
    nc = pl.cdiv(seq_len, T)
    S_p = nc * T

    # --- Glue: embedding gather + zero padding + bf16 operand prep (plain JAX).
    emb = emb_table[x].astype(jnp.float32)                       # (S, B, E)
    emb = jnp.pad(emb, ((0, S_p - seq_len),
                        (0, B_p - batch),
                        (0, E_p - emb_dim)))
    emb = emb.astype(jnp.bfloat16)                               # bf16 MXU operand

    h0 = jnp.pad(hidden.astype(jnp.float32),
                 ((0, B_p - batch), (0, H_p - hidden_size)))

    wih_t = jnp.pad(w_ih.T.astype(jnp.float32),
                    ((0, E_p - emb_dim), (0, H_p - hidden_size))).astype(jnp.bfloat16)
    whh_t = jnp.pad(w_hh.T.astype(jnp.float32),
                    ((0, H_p - hidden_size), (0, H_p - hidden_size))).astype(jnp.bfloat16)
    brnn = jnp.pad((b_ih + b_hh).astype(jnp.float32),
                   (0, H_p - hidden_size)).reshape(1, H_p)
    wfc_t = jnp.pad(w_fc.T.astype(jnp.float32),
                    ((0, H_p - hidden_size), (0, O_p - output_size))).astype(jnp.bfloat16)
    bfc = jnp.pad(b_fc.astype(jnp.float32),
                  (0, O_p - output_size)).reshape(1, O_p)

    kwargs = dict(seq_len=seq_len, T=T, nc=nc, nb=nb, BB=BB,
                  E_p=E_p, H_p=H_p, O_p=O_p, needs_mask=needs_mask)
    try:
        logits_p, hfinal_p = _call_rnn_pallas(
            h0, emb, wih_t, whh_t, brnn, wfc_t, bfc,
            single_buffer_weights=True, **kwargs)
    except Exception:
        # Fallback: JAX versions without BlockSpec pipeline_mode / Buffered(1) support.
        logits_p, hfinal_p = _call_rnn_pallas(
            h0, emb, wih_t, whh_t, brnn, wfc_t, bfc,
            single_buffer_weights=False, **kwargs)

    outputs = logits_p[:seq_len, :batch, :output_size]
    h_final = hfinal_p[:batch, :hidden_size]
    return outputs, h_final


def init_params(key, vocab_size, embedding_dim, hidden_size, output_size):
    ks = jax.random.split(key, 7)
    s = 0.1
    return {
        "embedding": jax.random.normal(ks[0], (vocab_size, embedding_dim), jnp.float32) * s,
        "w_ih": jax.random.normal(ks[1], (hidden_size, embedding_dim), jnp.float32) * s,
        "b_ih": jax.random.normal(ks[2], (hidden_size,), jnp.float32) * s,
        "w_hh": jax.random.normal(ks[3], (hidden_size, hidden_size), jnp.float32) * s,
        "b_hh": jax.random.normal(ks[4], (hidden_size,), jnp.float32) * s,
        "w_fc": jax.random.normal(ks[5], (output_size, hidden_size), jnp.float32) * s,
        "b_fc": jax.random.normal(ks[6], (output_size,), jnp.float32) * s,
    }


def reference_forward(x, params, hidden=None):
    """Pure-JAX f32 reference mirroring the PyTorch module."""
    emb_table, w_ih, b_ih, w_hh, b_hh, w_fc, b_fc = (
        params["embedding"], params["w_ih"], params["b_ih"],
        params["w_hh"], params["b_hh"], params["w_fc"], params["b_fc"])
    seq_len, batch = x.shape
    hidden_size = w_hh.shape[0]
    if hidden is None:
        hidden = jnp.zeros((batch, hidden_size), jnp.float32)
    outs = []
    h = hidden
    for t in range(seq_len):
        e = emb_table[x[t]]
        h = jnp.tanh(e @ w_ih.T + b_ih + h @ w_hh.T + b_hh)
        outs.append(h @ w_fc.T + b_fc)
    return jnp.stack(outs), h


if __name__ == "__main__":
    vocab_size, embedding_dim, hidden_size, output_size = 32, 16, 32, 16
    seq_len, batch = 8, 2

    key = jax.random.PRNGKey(0)
    kp, kx = jax.random.split(key)
    params = init_params(kp, vocab_size, embedding_dim, hidden_size, output_size)
    x = jax.random.randint(kx, (seq_len, batch), 0, vocab_size, dtype=jnp.int32)

    outputs, h_final = simple_seq2seq_rnn_forward(x, params)
    jax.block_until_ready((outputs, h_final))

    ref_out, ref_h = reference_forward(x, params)
    assert outputs.shape == (seq_len, batch, output_size)
    assert h_final.shape == (batch, hidden_size)
    # bf16 MXU operands (f32 accumulation) -> relaxed tolerance vs. the f32 reference.
    assert jnp.allclose(outputs, ref_out, atol=1e-2, rtol=1e-2)
    assert jnp.allclose(h_final, ref_h, atol=1e-2, rtol=1e-2)

    print("KERNEL_OK")
</pallas_src>

<mosaic_0001>
module attributes {stable_mosaic.version = 11 : i64} {
  func.func @kernel(%arg0: i32, %arg1: i32, %arg2: memref<8x128xf32, #tpu.memory_space<vmem>>, %arg3: memref<8x8x128xbf16, #tpu.memory_space<vmem>>, %arg4: memref<128x128xbf16, #tpu.memory_space<vmem>>, %arg5: memref<128x128xbf16, #tpu.memory_space<vmem>>, %arg6: memref<1x128xf32, #tpu.memory_space<vmem>>, %arg7: memref<128x128xbf16, #tpu.memory_space<vmem>>, %arg8: memref<1x128xf32, #tpu.memory_space<vmem>>, %arg9: memref<8x8x128xf32, #tpu.memory_space<vmem>>, %arg10: memref<8x128xf32, #tpu.memory_space<vmem>>, %arg11: memref<8x128xf32, #tpu.memory_space<vmem>>, %arg12: memref<64x128xbf16, #tpu.memory_space<vmem>>, %arg13: memref<64x128xf32, #tpu.memory_space<vmem>>) attributes {dimension_semantics = [#tpu.dimension_semantics<parallel>, #tpu.dimension_semantics<arbitrary>], iteration_bounds = array<i64: 1, 1>, scalar_prefetch = 0 : i64, scratch_operands = 3 : i64, tpu.core_type = #tpu.core_type<tc>, window_params = [{transform_indices = @transform_0, window_bounds = array<i64: 8, 128>}, {transform_indices = @transform_1, window_bounds = array<i64: 8, 8, 128>}, {pipeline_mode = #tpu.pipeline_mode<synchronous>, transform_indices = @transform_2, window_bounds = array<i64: 128, 128>}, {pipeline_mode = #tpu.pipeline_mode<synchronous>, transform_indices = @transform_3, window_bounds = array<i64: 128, 128>}, {pipeline_mode = #tpu.pipeline_mode<synchronous>, transform_indices = @transform_4, window_bounds = array<i64: 1, 128>}, {pipeline_mode = #tpu.pipeline_mode<synchronous>, transform_indices = @transform_5, window_bounds = array<i64: 128, 128>}, {pipeline_mode = #tpu.pipeline_mode<synchronous>, transform_indices = @transform_6, window_bounds = array<i64: 1, 128>}, {transform_indices = @transform_7, window_bounds = array<i64: 8, 8, 128>}, {transform_indices = @transform_8, window_bounds = array<i64: 8, 128>}]} {
    %c0_i32 = arith.constant 0 : i32
    %0 = arith.cmpi eq, %arg1, %c0_i32 : i32
    %1 = arith.extui %0 : i1 to i32
    %c0_i32_0 = arith.constant 0 : i32
    %2 = arith.cmpi ne, %1, %c0_i32_0 : i32
    scf.if %2 {
      %c0_60 = arith.constant 0 : index
      %c0_61 = arith.constant 0 : index
      %113 = vector.load %arg2[%c0_60, %c0_61] : memref<8x128xf32, #tpu.memory_space<vmem>>, vector<8x128xf32>
      %c0_62 = arith.constant 0 : index
      %c0_63 = arith.constant 0 : index
      %114 = vector.load %arg11[%c0_62, %c0_63] : memref<8x128xf32, #tpu.memory_space<vmem>>, vector<8x128xf32>
      tpu.vector_store %arg11[%c0_62, %c0_63], %113 {strides = array<i32>} : memref<8x128xf32, #tpu.memory_space<vmem>>, vector<8x128xf32>,
    } else {
    }
    %c0 = arith.constant 0 : index
    %c0_1 = arith.constant 0 : index
    %c0_2 = arith.constant 0 : index
    %3 = vector.load %arg3[%c0, %c0_1, %c0_2] : memref<8x8x128xbf16, #tpu.memory_space<vmem>>, vector<8x8x128xbf16>
    %4 = vector.shape_cast %3 : vector<8x8x128xbf16> to vector<64x128xbf16>
    %c0_3 = arith.constant 0 : index
    %c0_4 = arith.constant 0 : index
    %5 = vector.load %arg4[%c0_3, %c0_4] : memref<128x128xbf16, #tpu.memory_space<vmem>>, vector<128x128xbf16>
    %cst = arith.constant dense<0.000000e+00> : vector<64x128xf32>
    %6 = tpu.matmul %4, %5, %cst {dimension_numbers = #tpu.dot_dimension_numbers<[1], [0], [0], [1], [0, 0, 1, 1], [], []>} : vector<64x128xbf16>, vector<128x128xbf16>, vector<64x128xf32> -> vector<64x128xf32>
    %c0_5 = arith.constant 0 : index
    %c0_6 = arith.constant 0 : index
    %7 = vector.load %arg6[%c0_5, %c0_6] : memref<1x128xf32, #tpu.memory_space<vmem>>, vector<1x128xf32>
    %8 = vector.broadcast %7 : vector<1x128xf32> to vector<64x128xf32>
    %9 = arith.addf %6, %8 : vector<64x128xf32>
    %c0_7 = arith.constant 0 : index
    %c0_8 = arith.constant 0 : index
    %10 = vector.load %arg13[%c0_7, %c0_8] : memref<64x128xf32, #tpu.memory_space<vmem>>, vector<64x128xf32>
    tpu.vector_store %arg13[%c0_7, %c0_8], %9 {strides = array<i32>} : memref<64x128xf32, #tpu.memory_space<vmem>>, vector<64x128xf32>,
    %c0_9 = arith.constant 0 : index
    %c0_10 = arith.constant 0 : index
    %11 = vector.load %arg5[%c0_9, %c0_10] : memref<128x128xbf16, #tpu.memory_space<vmem>>, vector<128x128xbf16>
    %c0_11 = arith.constant 0 : index
    %c0_12 = arith.constant 0 : index
    %12 = vector.load %arg11[%c0_11, %c0_12] : memref<8x128xf32, #tpu.memory_space<vmem>>, vector<8x128xf32>
    %c0_i32_13 = arith.constant 0 : i32
    %c8_i32 = arith.constant 8 : i32
    %13 = arith.muli %c0_i32_13, %c8_i32 : i32
    %14 = tpu.assume_multiple %13, 8 : i32
    %15 = arith.index_cast %14 : i32 to index
    %c0_14 = arith.constant 0 : index
    %16 = vector.load %arg13[%15, %c0_14] : memref<64x128xf32, #tpu.memory_space<vmem>>, vector<8x128xf32>
    %17 = arith.truncf %12 : vector<8x128xf32> to vector<8x128xbf16>
    %cst_15 = arith.constant dense<0.000000e+00> : vector<8x128xf32>
    %18 = tpu.matmul %17, %11, %cst_15 {dimension_numbers = #tpu.dot_dimension_numbers<[1], [0], [0], [1], [0, 0, 1, 1], [], []>} : vector<8x128xbf16>, vector<128x128xbf16>, vector<8x128xf32> -> vector<8x128xf32>
    %19 = arith.addf %16, %18 : vector<8x128xf32>
    %20 = math.tanh %19 : vector<8x128xf32>
    %21 = arith.truncf %20 : vector<8x128xf32> to vector<8x128xbf16>
    %22 = arith.index_cast %14 : i32 to index
    %c0_16 = arith.constant 0 : index
    %23 = vector.load %arg12[%22, %c0_16] : memref<64x128xbf16, #tpu.memory_space<vmem>>, vector<8x128xbf16>
    tpu.vector_store %arg12[%22, %c0_16], %21 {strides = array<i32>} : memref<64x128xbf16, #tpu.memory_space<vmem>>, vector<8x128xbf16>,
    %c1_i32 = arith.constant 1 : i32
    %c8_i32_17 = arith.constant 8 : i32
    %24 = arith.muli %c1_i32, %c8_i32_17 : i32
    %25 = tpu.assume_multiple %24, 8 : i32
    %26 = arith.index_cast %25 : i32 to index
    %c0_18 = arith.constant 0 : index
    %27 = vector.load %arg13[%26, %c0_18] : memref<64x128xf32, #tpu.memory_space<vmem>>, vector<8x128xf32>
    %28 = arith.truncf %20 : vector<8x128xf32> to vector<8x128xbf16>
    %cst_19 = arith.constant dense<0.000000e+00> : vector<8x128xf32>
    %29 = tpu.matmul %28, %11, %cst_19 {dimension_numbers = #tpu.dot_dimension_numbers<[1], [0], [0], [1], [0, 0, 1, 1], [], []>} : vector<8x128xbf16>, vector<128x128xbf16>, vector<8x128xf32> -> vector<8x128xf32>
    %30 = arith.addf %27, %29 : vector<8x128xf32>
    %31 = math.tanh %30 : vector<8x128xf32>
    %32 = arith.truncf %31 : vector<8x128xf32> to vector<8x128xbf16>
    %33 = arith.index_cast %25 : i32 to index
    %c0_20 = arith.constant 0 : index
    %34 = vector.load %arg12[%33, %c0_20] : memref<64x128xbf16, #tpu.memory_space<vmem>>, vector<8x128xbf16>
    tpu.vector_store %arg12[%33, %c0_20], %32 {strides = array<i32>} : memref<64x128xbf16, #tpu.memory_space<vmem>>, vector<8x128xbf16>,
    %c2_i32 = arith.constant 2 : i32
    %c8_i32_21 = arith.constant 8 : i32
    %35 = arith.muli %c2_i32, %c8_i32_21 : i32
    %36 = tpu.assume_multiple %35, 8 : i32
    %37 = arith.index_cast %36 : i32 to index
    %c0_22 = arith.constant 0 : index
    %38 = vector.load %arg13[%37, %c0_22] : memref<64x128xf32, #tpu.memory_space<vmem>>, vector<8x128xf32>
    %39 = arith.truncf %31 : vector<8x128xf32> to vector<8x128xbf16>
    %cst_23 = arith.constant dense<0.000000e+00> : vector<8x128xf32>
    %40 = tpu.matmul %39, %11, %cst_23 {dimension_numbers = #tpu.dot_dimension_numbers<[1], [0], [0], [1], [0, 0, 1, 1], [], []>} : vector<8x128xbf16>, vector<128x128xbf16>, vector<8x128xf32> -> vector<8x128xf32>
    %41 = arith.addf %38, %40 : vector<8x128xf32>
    %42 = math.tanh %41 : vector<8x128xf32>
    %43 = arith.truncf %42 : vector<8x128xf32> to vector<8x128xbf16>
    %44 = arith.index_cast %36 : i32 to index
    %c0_24 = arith.constant 0 : index
    %45 = vector.load %arg12[%44, %c0_24] : memref<64x128xbf16, #tpu.memory_space<vmem>>, vector<8x128xbf16>
    tpu.vector_store %arg12[%44, %c0_24], %43 {strides = array<i32>} : memref<64x128xbf16, #tpu.memory_space<vmem>>, vector<8x128xbf16>,
    %c3_i32 = arith.constant 3 : i32
    %c8_i32_25 = arith.constant 8 : i32
    %46 = arith.muli %c3_i32, %c8_i32_25 : i32
    %47 = tpu.assume_multiple %46, 8 : i32
    %48 = arith.index_cast %47 : i32 to index
    %c0_26 = arith.constant 0 : index
    %49 = vector.load %arg13[%48, %c0_26] : memref<64x128xf32, #tpu.memory_space<vmem>>, vector<8x128xf32>
    %50 = arith.truncf %42 : vector<8x128xf32> to vector<8x128xbf16>
    %cst_27 = arith.constant dense<0.000000e+00> : vector<8x128xf32>
    %51 = tpu.matmul %50, %11, %cst_27 {dimension_numbers = #tpu.dot_dimension_numbers<[1], [0], [0], [1], [0, 0, 1, 1], [], []>} : vector<8x128xbf16>, vector<128x128xbf16>, vector<8x128xf32> -> vector<8x128xf32>
    %52 = arith.addf %49, %51 : vector<8x128xf32>
    %53 = math.tanh %52 : vector<8x128xf32>
    %54 = arith.truncf %53 : vector<8x128xf32> to vector<8x128xbf16>
    %55 = arith.index_cast %47 : i32 to index
    %c0_28 = arith.constant 0 : index
    %56 = vector.load %arg12[%55, %c0_28] : memref<64x128xbf16, #tpu.memory_space<vmem>>, vector<8x128xbf16>
    tpu.vector_store %arg12[%55, %c0_28], %54 {strides = array<i32>} : memref<64x128xbf16, #tpu.memory_space<vmem>>, vector<8x128xbf16>,
    %c4_i32 = arith.constant 4 : i32
    %c8_i32_29 = arith.constant 8 : i32
    %57 = arith.muli %c4_i32, %c8_i32_29 : i32
    %58 = tpu.assume_multiple %57, 8 : i32
    %59 = arith.index_cast %58 : i32 to index
    %c0_30 = arith.constant 0 : index
    %60 = vector.load %arg13[%59, %c0_30] : memref<64x128xf32, #tpu.memory_space<vmem>>, vector<8x128xf32>
    %61 = arith.truncf %53 : vector<8x128xf32> to vector<8x128xbf16>
    %cst_31 = arith.constant dense<0.000000e+00> : vector<8x128xf32>
    %62 = tpu.matmul %61, %11, %cst_31 {dimension_numbers = #tpu.dot_dimension_numbers<[1], [0], [0], [1], [0, 0, 1, 1], [], []>} : vector<8x128xbf16>, vector<128x128xbf16>, vector<8x128xf32> -> vector<8x128xf32>
    %63 = arith.addf %60, %62 : vector<8x128xf32>
    %64 = math.tanh %63 : vector<8x128xf32>
    %65 = arith.truncf %64 : vector<8x128xf32> to vector<8x128xbf16>
    %66 = arith.index_cast %58 : i32 to index
    %c0_32 = arith.constant 0 : index
    %67 = vector.load %arg12[%66, %c0_32] : memref<64x128xbf16, #tpu.memory_space<vmem>>, vector<8x128xbf16>
    tpu.vector_store %arg12[%66, %c0_32], %65 {strides = array<i32>} : memref<64x128xbf16, #tpu.memory_space<vmem>>, vector<8x128xbf16>,
    %c5_i32 = arith.constant 5 : i32
    %c8_i32_33 = arith.constant 8 : i32
    %68 = arith.muli %c5_i32, %c8_i32_33 : i32
    %69 = tpu.assume_multiple %68, 8 : i32
    %70 = arith.index_cast %69 : i32 to index
    %c0_34 = arith.constant 0 : index
    %71 = vector.load %arg13[%70, %c0_34] : memref<64x128xf32, #tpu.memory_space<vmem>>, vector<8x128xf32>
    %72 = arith.truncf %64 : vector<8x128xf32> to vector<8x128xbf16>
    %cst_35 = arith.constant dense<0.000000e+00> : vector<8x128xf32>
    %73 = tpu.matmul %72, %11, %cst_35 {dimension_numbers = #tpu.dot_dimension_numbers<[1], [0], [0], [1], [0, 0, 1, 1], [], []>} : vector<8x128xbf16>, vector<128x128xbf16>, vector<8x128xf32> -> vector<8x128xf32>
    %74 = arith.addf %71, %73 : vector<8x128xf32>
    %75 = math.tanh %74 : vector<8x128xf32>
    %76 = arith.truncf %75 : vector<8x128xf32> to vector<8x128xbf16>
    %77 = arith.index_cast %69 : i32 to index
    %c0_36 = arith.constant 0 : index
    %78 = vector.load %arg12[%77, %c0_36] : memref<64x128xbf16, #tpu.memory_space<vmem>>, vector<8x128xbf16>
    tpu.vector_store %arg12[%77, %c0_36], %76 {strides = array<i32>} : memref<64x128xbf16, #tpu.memory_space<vmem>>, vector<8x128xbf16>,
    %c6_i32 = arith.constant 6 : i32
    %c8_i32_37 = arith.constant 8 : i32
    %79 = arith.muli %c6_i32, %c8_i32_37 : i32
    %80 = tpu.assume_multiple %79, 8 : i32
    %81 = arith.index_cast %80 : i32 to index
    %c0_38 = arith.constant 0 : index
    %82 = vector.load %arg13[%81, %c0_38] : memref<64x128xf32, #tpu.memory_space<vmem>>, vector<8x128xf32>
    %83 = arith.truncf %75 : vector<8x128xf32> to vector<8x128xbf16>
    %cst_39 = arith.constant dense<0.000000e+00> : vector<8x128xf32>
    %84 = tpu.matmul %83, %11, %cst_39 {dimension_numbers = #tpu.dot_dimension_numbers<[1], [0], [0], [1], [0, 0, 1, 1], [], []>} : vector<8x128xbf16>, vector<128x128xbf16>, vector<8x128xf32> -> vector<8x128xf32>
    %85 = arith.addf %82, %84 : vector<8x128xf32>
    %86 = math.tanh %85 : vector<8x128xf32>
    %87 = arith.truncf %86 : vector<8x128xf32> to vector<8x128xbf16>
    %88 = arith.index_cast %80 : i32 to index
    %c0_40 = arith.constant 0 : index
    %89 = vector.load %arg12[%88, %c0_40] : memref<64x128xbf16, #tpu.memory_space<vmem>>, vector<8x128xbf16>
    tpu.vector_store %arg12[%88, %c0_40], %87 {strides = array<i32>} : memref<64x128xbf16, #tpu.memory_space<vmem>>, vector<8x128xbf16>,
    %c7_i32 = arith.constant 7 : i32
    %c8_i32_41 = arith.constant 8 : i32
    %90 = arith.muli %c7_i32, %c8_i32_41 : i32
    %91 = tpu.assume_multiple %90, 8 : i32
    %92 = arith.index_cast %91 : i32 to index
    %c0_42 = arith.constant 0 : index
    %93 = vector.load %arg13[%92, %c0_42] : memref<64x128xf32, #tpu.memory_space<vmem>>, vector<8x128xf32>
    %94 = arith.truncf %86 : vector<8x128xf32> to vector<8x128xbf16>
    %cst_43 = arith.constant dense<0.000000e+00> : vector<8x128xf32>
    %95 = tpu.matmul %94, %11, %cst_43 {dimension_numbers = #tpu.dot_dimension_numbers<[1], [0], [0], [1], [0, 0, 1, 1], [], []>} : vector<8x128xbf16>, vector<128x128xbf16>, vector<8x128xf32> -> vector<8x128xf32>
    %96 = arith.addf %93, %95 : vector<8x128xf32>
    %97 = math.tanh %96 : vector<8x128xf32>
    %98 = arith.truncf %97 : vector<8x128xf32> to vector<8x128xbf16>
    %99 = arith.index_cast %91 : i32 to index
    %c0_44 = arith.constant 0 : index
    %100 = vector.load %arg12[%99, %c0_44] : memref<64x128xbf16, #tpu.memory_space<vmem>>, vector<8x128xbf16>
    tpu.vector_store %arg12[%99, %c0_44], %98 {strides = array<i32>} : memref<64x128xbf16, #tpu.memory_space<vmem>>, vector<8x128xbf16>,
    %c8_i32_45 = arith.constant 8 : i32
    %c0_46 = arith.constant 0 : index
    %c0_47 = arith.constant 0 : index
    %101 = vector.load %arg11[%c0_46, %c0_47] : memref<8x128xf32, #tpu.memory_space<vmem>>, vector<8x128xf32>
    tpu.vector_store %arg11[%c0_46, %c0_47], %97 {strides = array<i32>} : memref<8x128xf32, #tpu.memory_space<vmem>>, vector<8x128xf32>,
    %c0_48 = arith.constant 0 : index
    %c0_49 = arith.constant 0 : index
    %102 = vector.load %arg12[%c0_48, %c0_49] : memref<64x128xbf16, #tpu.memory_space<vmem>>, vector<64x128xbf16>
    %c0_50 = arith.constant 0 : index
    %c0_51 = arith.constant 0 : index
    %103 = vector.load %arg7[%c0_50, %c0_51] : memref<128x128xbf16, #tpu.memory_space<vmem>>, vector<128x128xbf16>
    %cst_52 = arith.constant dense<0.000000e+00> : vector<64x128xf32>
    %104 = tpu.matmul %102, %103, %cst_52 {dimension_numbers = #tpu.dot_dimension_numbers<[1], [0], [0], [1], [0, 0, 1, 1], [], []>} : vector<64x128xbf16>, vector<128x128xbf16>, vector<64x128xf32> -> vector<64x128xf32>
    %c0_53 = arith.constant 0 : index
    %c0_54 = arith.constant 0 : index
    %105 = vector.load %arg8[%c0_53, %c0_54] : memref<1x128xf32, #tpu.memory_space<vmem>>, vector<1x128xf32>
    %106 = vector.broadcast %105 : vector<1x128xf32> to vector<64x128xf32>
    %107 = arith.addf %104, %106 : vector<64x128xf32>
    %108 = vector.shape_cast %107 : vector<64x128xf32> to vector<8x8x128xf32>
    %c0_55 = arith.constant 0 : index
    %c0_56 = arith.constant 0 : index
    %c0_57 = arith.constant 0 : index
    %109 = vector.load %arg9[%c0_55, %c0_56, %c0_57] : memref<8x8x128xf32, #tpu.memory_space<vmem>>, vector<8x8x128xf32>
    tpu.vector_store %arg9[%c0_55, %c0_56, %c0_57], %108 {strides = array<i32>} : memref<8x8x128xf32, #tpu.memory_space<vmem>>, vector<8x8x128xf32>,
    %c0_i32_58 = arith.constant 0 : i32
    %110 = arith.cmpi eq, %arg1, %c0_i32_58 : i32
    %111 = arith.extui %110 : i1 to i32
    %c0_i32_59 = arith.constant 0 : i32
    %112 = arith.cmpi ne, %111, %c0_i32_59 : i32
    scf.if %112 {
      %c0_60 = arith.constant 0 : index
      %c0_61 = arith.constant 0 : index
      %113 = vector.load %arg10[%c0_60, %c0_61] : memref<8x128xf32, #tpu.memory_space<vmem>>, vector<8x128xf32>
      tpu.vector_store %arg10[%c0_60, %c0_61], %97 {strides = array<i32>} : memref<8x128xf32, #tpu.memory_space<vmem>>, vector<8x128xf32>,
    } else {
    }
    return
  }
  func.func @transform_0(%arg0: i32, %arg1: i32) -> (i32, i32) {
    %c0_i32 = arith.constant 0 : i32
    %c0_i32_0 = arith.constant 0 : i32
    return %arg0, %c0_i32 : i32, i32
  }
  func.func @transform_1(%arg0: i32, %arg1: i32) -> (i32, i32, i32) {
    %c0_i32 = arith.constant 0 : i32
    %c0_i32_0 = arith.constant 0 : i32
    return %arg1, %arg0, %c0_i32 : i32, i32, i32
  }
  func.func @transform_2(%arg0: i32, %arg1: i32) -> (i32, i32) {
    %c0_i32 = arith.constant 0 : i32
    %c0_i32_0 = arith.constant 0 : i32
    %c0_i32_1 = arith.constant 0 : i32
    return %c0_i32, %c0_i32_0 : i32, i32
  }
  func.func @transform_3(%arg0: i32, %arg1: i32) -> (i32, i32) {
    %c0_i32 = arith.constant 0 : i32
    %c0_i32_0 = arith.constant 0 : i32
    %c0_i32_1 = arith.constant 0 : i32
    return %c0_i32, %c0_i32_0 : i32, i32
  }
  func.func @transform_4(%arg0: i32, %arg1: i32) -> (i32, i32) {
    %c0_i32 = arith.constant 0 : i32
    %c0_i32_0 = arith.constant 0 : i32
    %c0_i32_1 = arith.constant 0 : i32
    return %c0_i32, %c0_i32_0 : i32, i32
  }
  func.func @transform_5(%arg0: i32, %arg1: i32) -> (i32, i32) {
    %c0_i32 = arith.constant 0 : i32
    %c0_i32_0 = arith.constant 0 : i32
    %c0_i32_1 = arith.constant 0 : i32
    return %c0_i32, %c0_i32_0 : i32, i32
  }
  func.func @transform_6(%arg0: i32, %arg1: i32) -> (i32, i32) {
    %c0_i32 = arith.constant 0 : i32
    %c0_i32_0 = arith.constant 0 : i32
    %c0_i32_1 = arith.constant 0 : i32
    return %c0_i32, %c0_i32_0 : i32, i32
  }
  func.func @transform_7(%arg0: i32, %arg1: i32) -> (i32, i32, i32) {
    %c0_i32 = arith.constant 0 : i32
    %c0_i32_0 = arith.constant 0 : i32
    return %arg1, %arg0, %c0_i32 : i32, i32, i32
  }
  func.func @transform_8(%arg0: i32, %arg1: i32) -> (i32, i32) {
    %c0_i32 = arith.constant 0 : i32
    %c0_i32_0 = arith.constant 0 : i32
    return %arg0, %c0_i32 : i32, i32
  }
}

module attributes {stable_mosaic.version = 11 : i64} {
  func.func @kernel(%arg0: i32, %arg1: i32, %arg2: memref<8x128xf32, #tpu.memory_space<vmem>>, %arg3: memref<8x8x128xbf16, #tpu.memory_space<vmem>>, %arg4: memref<128x128xbf16, #tpu.memory_space<vmem>>, %arg5: memref<128x128xbf16, #tpu.memory_space<vmem>>, %arg6: memref<1x128xf32, #tpu.memory_space<vmem>>, %arg7: memref<128x128xbf16, #tpu.memory_space<vmem>>, %arg8: memref<1x128xf32, #tpu.memory_space<vmem>>, %arg9: memref<8x8x128xf32, #tpu.memory_space<vmem>>, %arg10: memref<8x128xf32, #tpu.memory_space<vmem>>, %arg11: memref<8x128xf32, #tpu.memory_space<vmem>>, %arg12: memref<64x128xbf16, #tpu.memory_space<vmem>>, %arg13: memref<64x128xf32, #tpu.memory_space<vmem>>) attributes {dimension_semantics = [#tpu.dimension_semantics<parallel>, #tpu.dimension_semantics<arbitrary>], iteration_bounds = array<i64: 1, 1>, scalar_prefetch = 0 : i64, scratch_operands = 3 : i64, tpu.core_type = #tpu.core_type<tc>, window_params = [{transform_indices = @transform_0, window_bounds = array<i64: 8, 128>}, {transform_indices = @transform_1, window_bounds = array<i64: 8, 8, 128>}, {pipeline_mode = #tpu.pipeline_mode<synchronous>, transform_indices = @transform_2, window_bounds = array<i64: 128, 128>}, {pipeline_mode = #tpu.pipeline_mode<synchronous>, transform_indices = @transform_3, window_bounds = array<i64: 128, 128>}, {pipeline_mode = #tpu.pipeline_mode<synchronous>, transform_indices = @transform_4, window_bounds = array<i64: 1, 128>}, {pipeline_mode = #tpu.pipeline_mode<synchronous>, transform_indices = @transform_5, window_bounds = array<i64: 128, 128>}, {pipeline_mode = #tpu.pipeline_mode<synchronous>, transform_indices = @transform_6, window_bounds = array<i64: 1, 128>}, {transform_indices = @transform_7, window_bounds = array<i64: 8, 8, 128>}, {transform_indices = @transform_8, window_bounds = array<i64: 8, 128>}]} {
    %c0_i32 = arith.constant 0 : i32
    %0 = arith.cmpi eq, %arg1, %c0_i32 : i32
    %1 = arith.extui %0 : i1 to i32
    %c0_i32_0 = arith.constant 0 : i32
    %2 = arith.cmpi ne, %1, %c0_i32_0 : i32
    scf.if %2 {
      %c0_60 = arith.constant 0 : index
      %c0_61 = arith.constant 0 : index
      %113 = vector.load %arg2[%c0_60, %c0_61] : memref<8x128xf32, #tpu.memory_space<vmem>>, vector<8x128xf32>
      %c0_62 = arith.constant 0 : index
      %c0_63 = arith.constant 0 : index
      %114 = vector.load %arg11[%c0_62, %c0_63] : memref<8x128xf32, #tpu.memory_space<vmem>>, vector<8x128xf32>
      tpu.vector_store %arg11[%c0_62, %c0_63], %113 {strides = array<i32>} : memref<8x128xf32, #tpu.memory_space<vmem>>, vector<8x128xf32>,
    } else {
    }
    %c0 = arith.constant 0 : index
    %c0_1 = arith.constant 0 : index
    %c0_2 = arith.constant 0 : index
    %3 = vector.load %arg3[%c0, %c0_1, %c0_2] : memref<8x8x128xbf16, #tpu.memory_space<vmem>>, vector<8x8x128xbf16>
    %4 = vector.shape_cast %3 : vector<8x8x128xbf16> to vector<64x128xbf16>
    %c0_3 = arith.constant 0 : index
    %c0_4 = arith.constant 0 : index
    %5 = vector.load %arg4[%c0_3, %c0_4] : memref<128x128xbf16, #tpu.memory_space<vmem>>, vector<128x128xbf16>
    %cst = arith.constant dense<0.000000e+00> : vector<64x128xf32>
    %6 = tpu.matmul %4, %5, %cst {dimension_numbers = #tpu.dot_dimension_numbers<[1], [0], [0], [1], [0, 0, 1, 1], [], []>} : vector<64x128xbf16>, vector<128x128xbf16>, vector<64x128xf32> -> vector<64x128xf32>
    %c0_5 = arith.constant 0 : index
    %c0_6 = arith.constant 0 : index
    %7 = vector.load %arg6[%c0_5, %c0_6] : memref<1x128xf32, #tpu.memory_space<vmem>>, vector<1x128xf32>
    %8 = vector.broadcast %7 : vector<1x128xf32> to vector<64x128xf32>
    %9 = arith.addf %6, %8 : vector<64x128xf32>
    %c0_7 = arith.constant 0 : index
    %c0_8 = arith.constant 0 : index
    %10 = vector.load %arg13[%c0_7, %c0_8] : memref<64x128xf32, #tpu.memory_space<vmem>>, vector<64x128xf32>
    tpu.vector_store %arg13[%c0_7, %c0_8], %9 {strides = array<i32>} : memref<64x128xf32, #tpu.memory_space<vmem>>, vector<64x128xf32>,
    %c0_9 = arith.constant 0 : index
    %c0_10 = arith.constant 0 : index
    %11 = vector.load %arg5[%c0_9, %c0_10] : memref<128x128xbf16, #tpu.memory_space<vmem>>, vector<128x128xbf16>
    %c0_11 = arith.constant 0 : index
    %c0_12 = arith.constant 0 : index
    %12 = vector.load %arg11[%c0_11, %c0_12] : memref<8x128xf32, #tpu.memory_space<vmem>>, vector<8x128xf32>
    %c0_i32_13 = arith.constant 0 : i32
    %c8_i32 = arith.constant 8 : i32
    %13 = arith.muli %c0_i32_13, %c8_i32 : i32
    %14 = tpu.assume_multiple %13, 8 : i32
    %15 = arith.index_cast %14 : i32 to index
    %c0_14 = arith.constant 0 : index
    %16 = vector.load %arg13[%15, %c0_14] : memref<64x128xf32, #tpu.memory_space<vmem>>, vector<8x128xf32>
    %17 = arith.truncf %12 : vector<8x128xf32> to vector<8x128xbf16>
    %cst_15 = arith.constant dense<0.000000e+00> : vector<8x128xf32>
    %18 = tpu.matmul %17, %11, %cst_15 {dimension_numbers = #tpu.dot_dimension_numbers<[1], [0], [0], [1], [0, 0, 1, 1], [], []>} : vector<8x128xbf16>, vector<128x128xbf16>, vector<8x128xf32> -> vector<8x128xf32>
    %19 = arith.addf %16, %18 : vector<8x128xf32>
    %20 = math.tanh %19 : vector<8x128xf32>
    %21 = arith.truncf %20 : vector<8x128xf32> to vector<8x128xbf16>
    %22 = arith.index_cast %14 : i32 to index
    %c0_16 = arith.constant 0 : index
    %23 = vector.load %arg12[%22, %c0_16] : memref<64x128xbf16, #tpu.memory_space<vmem>>, vector<8x128xbf16>
    tpu.vector_store %arg12[%22, %c0_16], %21 {strides = array<i32>} : memref<64x128xbf16, #tpu.memory_space<vmem>>, vector<8x128xbf16>,
    %c1_i32 = arith.constant 1 : i32
    %c8_i32_17 = arith.constant 8 : i32
    %24 = arith.muli %c1_i32, %c8_i32_17 : i32
    %25 = tpu.assume_multiple %24, 8 : i32
    %26 = arith.index_cast %25 : i32 to index
    %c0_18 = arith.constant 0 : index
    %27 = vector.load %arg13[%26, %c0_18] : memref<64x128xf32, #tpu.memory_space<vmem>>, vector<8x128xf32>
    %28 = arith.truncf %20 : vector<8x128xf32> to vector<8x128xbf16>
    %cst_19 = arith.constant dense<0.000000e+00> : vector<8x128xf32>
    %29 = tpu.matmul %28, %11, %cst_19 {dimension_numbers = #tpu.dot_dimension_numbers<[1], [0], [0], [1], [0, 0, 1, 1], [], []>} : vector<8x128xbf16>, vector<128x128xbf16>, vector<8x128xf32> -> vector<8x128xf32>
    %30 = arith.addf %27, %29 : vector<8x128xf32>
    %31 = math.tanh %30 : vector<8x128xf32>
    %32 = arith.truncf %31 : vector<8x128xf32> to vector<8x128xbf16>
    %33 = arith.index_cast %25 : i32 to index
    %c0_20 = arith.constant 0 : index
    %34 = vector.load %arg12[%33, %c0_20] : memref<64x128xbf16, #tpu.memory_space<vmem>>, vector<8x128xbf16>
    tpu.vector_store %arg12[%33, %c0_20], %32 {strides = array<i32>} : memref<64x128xbf16, #tpu.memory_space<vmem>>, vector<8x128xbf16>,
    %c2_i32 = arith.constant 2 : i32
    %c8_i32_21 = arith.constant 8 : i32
    %35 = arith.muli %c2_i32, %c8_i32_21 : i32
    %36 = tpu.assume_multiple %35, 8 : i32
    %37 = arith.index_cast %36 : i32 to index
    %c0_22 = arith.constant 0 : index
    %38 = vector.load %arg13[%37, %c0_22] : memref<64x128xf32, #tpu.memory_space<vmem>>, vector<8x128xf32>
    %39 = arith.truncf %31 : vector<8x128xf32> to vector<8x128xbf16>
    %cst_23 = arith.constant dense<0.000000e+00> : vector<8x128xf32>
    %40 = tpu.matmul %39, %11, %cst_23 {dimension_numbers = #tpu.dot_dimension_numbers<[1], [0], [0], [1], [0, 0, 1, 1], [], []>} : vector<8x128xbf16>, vector<128x128xbf16>, vector<8x128xf32> -> vector<8x128xf32>
    %41 = arith.addf %38, %40 : vector<8x128xf32>
    %42 = math.tanh %41 : vector<8x128xf32>
    %43 = arith.truncf %42 : vector<8x128xf32> to vector<8x128xbf16>
    %44 = arith.index_cast %36 : i32 to index
    %c0_24 = arith.constant 0 : index
    %45 = vector.load %arg12[%44, %c0_24] : memref<64x128xbf16, #tpu.memory_space<vmem>>, vector<8x128xbf16>
    tpu.vector_store %arg12[%44, %c0_24], %43 {strides = array<i32>} : memref<64x128xbf16, #tpu.memory_space<vmem>>, vector<8x128xbf16>,
    %c3_i32 = arith.constant 3 : i32
    %c8_i32_25 = arith.constant 8 : i32
    %46 = arith.muli %c3_i32, %c8_i32_25 : i32
    %47 = tpu.assume_multiple %46, 8 : i32
    %48 = arith.index_cast %47 : i32 to index
    %c0_26 = arith.constant 0 : index
    %49 = vector.load %arg13[%48, %c0_26] : memref<64x128xf32, #tpu.memory_space<vmem>>, vector<8x128xf32>
    %50 = arith.truncf %42 : vector<8x128xf32> to vector<8x128xbf16>
    %cst_27 = arith.constant dense<0.000000e+00> : vector<8x128xf32>
    %51 = tpu.matmul %50, %11, %cst_27 {dimension_numbers = #tpu.dot_dimension_numbers<[1], [0], [0], [1], [0, 0, 1, 1], [], []>} : vector<8x128xbf16>, vector<128x128xbf16>, vector<8x128xf32> -> vector<8x128xf32>
    %52 = arith.addf %49, %51 : vector<8x128xf32>
    %53 = math.tanh %52 : vector<8x128xf32>
    %54 = arith.truncf %53 : vector<8x128xf32> to vector<8x128xbf16>
    %55 = arith.index_cast %47 : i32 to index
    %c0_28 = arith.constant 0 : index
    %56 = vector.load %arg12[%55, %c0_28] : memref<64x128xbf16, #tpu.memory_space<vmem>>, vector<8x128xbf16>
    tpu.vector_store %arg12[%55, %c0_28], %54 {strides = array<i32>} : memref<64x128xbf16, #tpu.memory_space<vmem>>, vector<8x128xbf16>,
    %c4_i32 = arith.constant 4 : i32
    %c8_i32_29 = arith.constant 8 : i32
    %57 = arith.muli %c4_i32, %c8_i32_29 : i32
    %58 = tpu.assume_multiple %57, 8 : i32
    %59 = arith.index_cast %58 : i32 to index
    %c0_30 = arith.constant 0 : index
    %60 = vector.load %arg13[%59, %c0_30] : memref<64x128xf32, #tpu.memory_space<vmem>>, vector<8x128xf32>
    %61 = arith.truncf %53 : vector<8x128xf32> to vector<8x128xbf16>
    %cst_31 = arith.constant dense<0.000000e+00> : vector<8x128xf32>
    %62 = tpu.matmul %61, %11, %cst_31 {dimension_numbers = #tpu.dot_dimension_numbers<[1], [0], [0], [1], [0, 0, 1, 1], [], []>} : vector<8x128xbf16>, vector<128x128xbf16>, vector<8x128xf32> -> vector<8x128xf32>
    %63 = arith.addf %60, %62 : vector<8x128xf32>
    %64 = math.tanh %63 : vector<8x128xf32>
    %65 = arith.truncf %64 : vector<8x128xf32> to vector<8x128xbf16>
    %66 = arith.index_cast %58 : i32 to index
    %c0_32 = arith.constant 0 : index
    %67 = vector.load %arg12[%66, %c0_32] : memref<64x128xbf16, #tpu.memory_space<vmem>>, vector<8x128xbf16>
    tpu.vector_store %arg12[%66, %c0_32], %65 {strides = array<i32>} : memref<64x128xbf16, #tpu.memory_space<vmem>>, vector<8x128xbf16>,
    %c5_i32 = arith.constant 5 : i32
    %c8_i32_33 = arith.constant 8 : i32
    %68 = arith.muli %c5_i32, %c8_i32_33 : i32
    %69 = tpu.assume_multiple %68, 8 : i32
    %70 = arith.index_cast %69 : i32 to index
    %c0_34 = arith.constant 0 : index
    %71 = vector.load %arg13[%70, %c0_34] : memref<64x128xf32, #tpu.memory_space<vmem>>, vector<8x128xf32>
    %72 = arith.truncf %64 : vector<8x128xf32> to vector<8x128xbf16>
    %cst_35 = arith.constant dense<0.000000e+00> : vector<8x128xf32>
    %73 = tpu.matmul %72, %11, %cst_35 {dimension_numbers = #tpu.dot_dimension_numbers<[1], [0], [0], [1], [0, 0, 1, 1], [], []>} : vector<8x128xbf16>, vector<128x128xbf16>, vector<8x128xf32> -> vector<8x128xf32>
    %74 = arith.addf %71, %73 : vector<8x128xf32>
    %75 = math.tanh %74 : vector<8x128xf32>
    %76 = arith.truncf %75 : vector<8x128xf32> to vector<8x128xbf16>
    %77 = arith.index_cast %69 : i32 to index
    %c0_36 = arith.constant 0 : index
    %78 = vector.load %arg12[%77, %c0_36] : memref<64x128xbf16, #tpu.memory_space<vmem>>, vector<8x128xbf16>
    tpu.vector_store %arg12[%77, %c0_36], %76 {strides = array<i32>} : memref<64x128xbf16, #tpu.memory_space<vmem>>, vector<8x128xbf16>,
    %c6_i32 = arith.constant 6 : i32
    %c8_i32_37 = arith.constant 8 : i32
    %79 = arith.muli %c6_i32, %c8_i32_37 : i32
    %80 = tpu.assume_multiple %79, 8 : i32
    %81 = arith.index_cast %80 : i32 to index
    %c0_38 = arith.constant 0 : index
    %82 = vector.load %arg13[%81, %c0_38] : memref<64x128xf32, #tpu.memory_space<vmem>>, vector<8x128xf32>
    %83 = arith.truncf %75 : vector<8x128xf32> to vector<8x128xbf16>
    %cst_39 = arith.constant dense<0.000000e+00> : vector<8x128xf32>
    %84 = tpu.matmul %83, %11, %cst_39 {dimension_numbers = #tpu.dot_dimension_numbers<[1], [0], [0], [1], [0, 0, 1, 1], [], []>} : vector<8x128xbf16>, vector<128x128xbf16>, vector<8x128xf32> -> vector<8x128xf32>
    %85 = arith.addf %82, %84 : vector<8x128xf32>
    %86 = math.tanh %85 : vector<8x128xf32>
    %87 = arith.truncf %86 : vector<8x128xf32> to vector<8x128xbf16>
    %88 = arith.index_cast %80 : i32 to index
    %c0_40 = arith.constant 0 : index
    %89 = vector.load %arg12[%88, %c0_40] : memref<64x128xbf16, #tpu.memory_space<vmem>>, vector<8x128xbf16>
    tpu.vector_store %arg12[%88, %c0_40], %87 {strides = array<i32>} : memref<64x128xbf16, #tpu.memory_space<vmem>>, vector<8x128xbf16>,
    %c7_i32 = arith.constant 7 : i32
    %c8_i32_41 = arith.constant 8 : i32
    %90 = arith.muli %c7_i32, %c8_i32_41 : i32
    %91 = tpu.assume_multiple %90, 8 : i32
    %92 = arith.index_cast %91 : i32 to index
    %c0_42 = arith.constant 0 : index
    %93 = vector.load %arg13[%92, %c0_42] : memref<64x128xf32, #tpu.memory_space<vmem>>, vector<8x128xf32>
    %94 = arith.truncf %86 : vector<8x128xf32> to vector<8x128xbf16>
    %cst_43 = arith.constant dense<0.000000e+00> : vector<8x128xf32>
    %95 = tpu.matmul %94, %11, %cst_43 {dimension_numbers = #tpu.dot_dimension_numbers<[1], [0], [0], [1], [0, 0, 1, 1], [], []>} : vector<8x128xbf16>, vector<128x128xbf16>, vector<8x128xf32> -> vector<8x128xf32>
    %96 = arith.addf %93, %95 : vector<8x128xf32>
    %97 = math.tanh %96 : vector<8x128xf32>
    %98 = arith.truncf %97 : vector<8x128xf32> to vector<8x128xbf16>
    %99 = arith.index_cast %91 : i32 to index
    %c0_44 = arith.constant 0 : index
    %100 = vector.load %arg12[%99, %c0_44] : memref<64x128xbf16, #tpu.memory_space<vmem>>, vector<8x128xbf16>
    tpu.vector_store %arg12[%99, %c0_44], %98 {strides = array<i32>} : memref<64x128xbf16, #tpu.memory_space<vmem>>, vector<8x128xbf16>,
    %c8_i32_45 = arith.constant 8 : i32
    %c0_46 = arith.constant 0 : index
    %c0_47 = arith.constant 0 : index
    %101 = vector.load %arg11[%c0_46, %c0_47] : memref<8x128xf32, #tpu.memory_space<vmem>>, vector<8x128xf32>
    tpu.vector_store %arg11[%c0_46, %c0_47], %97 {strides = array<i32>} : memref<8x128xf32, #tpu.memory_space<vmem>>, vector<8x128xf32>,
    %c0_48 = arith.constant 0 : index
    %c0_49 = arith.constant 0 : index
    %102 = vector.load %arg12[%c0_48, %c0_49] : memref<64x128xbf16, #tpu.memory_space<vmem>>, vector<64x128xbf16>
    %c0_50 = arith.constant 0 : index
    %c0_51 = arith.constant 0 : index
    %103 = vector.load %arg7[%c0_50, %c0_51] : memref<128x128xbf16, #tpu.memory_space<vmem>>, vector<128x128xbf16>
    %cst_52 = arith.constant dense<0.000000e+00> : vector<64x128xf32>
    %104 = tpu.matmul %102, %103, %cst_52 {dimension_numbers = #tpu.dot_dimension_numbers<[1], [0], [0], [1], [0, 0, 1, 1], [], []>} : vector<64x128xbf16>, vector<128x128xbf16>, vector<64x128xf32> -> vector<64x128xf32>
    %c0_53 = arith.constant 0 : index
    %c0_54 = arith.constant 0 : index
    %105 = vector.load %arg8[%c0_53, %c0_54] : memref<1x128xf32, #tpu.memory_space<vmem>>, vector<1x128xf32>
    %106 = vector.broadcast %105 : vector<1x128xf32> to vector<64x128xf32>
    %107 = arith.addf %104, %106 : vector<64x128xf32>
    %108 = vector.shape_cast %107 : vector<64x128xf32> to vector<8x8x128xf32>
    %c0_55 = arith.constant 0 : index
    %c0_56 = arith.constant 0 : index
    %c0_57 = arith.constant 0 : index
    %109 = vector.load %arg9[%c0_55, %c0_56, %c0_57] : memref<8x8x128xf32, #tpu.memory_space<vmem>>, vector<8x8x128xf32>
    tpu.vector_store %arg9[%c0_55, %c0_56, %c0_57], %108 {strides = array<i32>} : memref<8x8x128xf32, #tpu.memory_space<vmem>>, vector<8x8x128xf32>,
    %c0_i32_58 = arith.constant 0 : i32
    %110 = arith.cmpi eq, %arg1, %c0_i32_58 : i32
    %111 = arith.extui %110 : i1 to i32
    %c0_i32_59 = arith.constant 0 : i32
    %112 = arith.cmpi ne, %111, %c0_i32_59 : i32
    scf.if %112 {
      %c0_60 = arith.constant 0 : index
      %c0_61 = arith.constant 0 : index
      %113 = vector.load %arg10[%c0_60, %c0_61] : memref<8x128xf32, #tpu.memory_space<vmem>>, vector<8x128xf32>
      tpu.vector_store %arg10[%c0_60, %c0_61], %97 {strides = array<i32>} : memref<8x128xf32, #tpu.memory_space<vmem>>, vector<8x128xf32>,
    } else {
    }
    return
  }
  func.func @transform_0(%arg0: i32, %arg1: i32) -> (i32, i32) {
    %c0_i32 = arith.constant 0 : i32
    %c0_i32_0 = arith.constant 0 : i32
    return %arg0, %c0_i32 : i32, i32
  }
  func.func @transform_1(%arg0: i32, %arg1: i32) -> (i32, i32, i32) {
    %c0_i32 = arith.constant 0 : i32
    %c0_i32_0 = arith.constant 0 : i32
    return %arg1, %arg0, %c0_i32 : i32, i32, i32
  }
  func.func @transform_2(%arg0: i32, %arg1: i32) -> (i32, i32) {
    %c0_i32 = arith.constant 0 : i32
    %c0_i32_0 = arith.constant 0 : i32
    %c0_i32_1 = arith.constant 0 : i32
    return %c0_i32, %c0_i32_0 : i32, i32
  }
  func.func @transform_3(%arg0: i32, %arg1: i32) -> (i32, i32) {
    %c0_i32 = arith.constant 0 : i32
    %c0_i32_0 = arith.constant 0 : i32
    %c0_i32_1 = arith.constant 0 : i32
    return %c0_i32, %c0_i32_0 : i32, i32
  }
  func.func @transform_4(%arg0: i32, %arg1: i32) -> (i32, i32) {
    %c0_i32 = arith.constant 0 : i32
    %c0_i32_0 = arith.constant 0 : i32
    %c0_i32_1 = arith.constant 0 : i32
    return %c0_i32, %c0_i32_0 : i32, i32
  }
  func.func @transform_5(%arg0: i32, %arg1: i32) -> (i32, i32) {
    %c0_i32 = arith.constant 0 : i32
    %c0_i32_0 = arith.constant 0 : i32
    %c0_i32_1 = arith.constant 0 : i32
    return %c0_i32, %c0_i32_0 : i32, i32
  }
  func.func @transform_6(%arg0: i32, %arg1: i32) -> (i32, i32) {
    %c0_i32 = arith.constant 0 : i32
    %c0_i32_0 = arith.constant 0 : i32
    %c0_i32_1 = arith.constant 0 : i32
    return %c0_i32, %c0_i32_0 : i32, i32
  }
  func.func @transform_7(%arg0: i32, %arg1: i32) -> (i32, i32, i32) {
    %c0_i32 = arith.constant 0 : i32
    %c0_i32_0 = arith.constant 0 : i32
    return %arg1, %arg0, %c0_i32 : i32, i32, i32
  }
  func.func @transform_8(%arg0: i32, %arg1: i32) -> (i32, i32) {
    %c0_i32 = arith.constant 0 : i32
    %c0_i32_0 = arith.constant 0 : i32
    return %arg0, %c0_i32 : i32, i32
  }
}

</mosaic_0001>

<bundles_post_ra>
// kernel: tpu_custom_call.1
= control target key start
LH: loop header
LB: loop body
LE: loop exit
PB: predicated region body
PF: predicated region fallthrough
CT: control target
= control target key end

     0   :  { %14 = vsyncpa [#allocation6], 0  ;;  %s1764_s0 = inlined_call_operand.hbm [shape: f32[8,128], index: 0, kind: input, shape index: {}]   ;;  %s1765_s1 = inlined_call_operand.hbm [shape: bf16[8,8,128], index: 1, kind: input, shape index: {}]   ;;  %s1766_s2 = inlined_call_operand.hbm [shape: bf16[128,128], index: 2, kind: input, shape index: {}]   ;;  %s1767_s3 = inlined_call_operand.hbm [shape: bf16[128,128], index: 3, kind: input, shape index: {}]   ;;  %s1768_s4 = inlined_call_operand.vmem [shape: f32[1,128], index: 4, kind: input, shape index: {}]   ;;  %s1769_s5 = inlined_call_operand.hbm [shape: bf16[128,128], index: 5, kind: input, shape index: {}]   ;;  %s1770_s6 = inlined_call_operand.vmem [shape: f32[1,128], index: 6, kind: input, shape index: {}]   ;;  %s1771_s7 = inlined_call_operand.hbm [shape: f32[8,8,128], index: 7, kind: output, shape index: {0}]   ;;  %s1772_s8 = inlined_call_operand.hbm [shape: f32[8,128], index: 8, kind: output, shape index: {1}]  }
   0x1   :  { %15 = vsyncpa [#allocation9], 0 }
   0x2   :  { %16 = vsyncpa [#allocation12], 0 }
   0x3   :  { %17 = vsyncpa [#allocation7], 0 }
   0x4   :  { %18 = vsyncpa [#allocation16], 0  ;;  %s1482_s27 = smov [#allocation8]  }
   0x5   :  { %s34_s28 = sshll.u32 %s1482_s27, 4  ;;  %s35_s28 = int_to_ptr.vmem [resolvable:$true] %s34_s28 }
   0x6   :  { %s1340_s29 = scalar_lea.vmem %s35_s28, 512  ;;  %p1345_p1 = scmp.lt.s32.totalorder %s35_s28, %s35_s28 }
   0x7   :  { %p1341_p0 = scmp.ne.s32.totalorder %s35_s28, %s1340_s29  ;;  %p1346_p2 = scmp.lt.s32.totalorder %s1340_s29, %s1340_s29 }
   0x9   :  { %p1347_p3 = por %p1346_p2, %p1345_p1 }
   0xb   :  { %p1348_p4 = pnand %p1347_p3, %p1341_p0 }
   0xd   :  { %1351 = shalt.err (!%p1348_p4)
}
   0xe   :  { %s1483_s30 = smov 64   ;;  %s1484_s9 = smov 4  }
   0xf   :  { %40 = dma.hbm_to_vmem [thread:$0]  %s1765_s1, 512, %s35_s28, [#allocation9], %s1483_s30, %s1483_s30, %s1484_s9  }
  0x10   :  { %s1485_s12 = smov [#allocation11]   ;;  %s1486_s14 = smov [#allocation5]  }
  0x11   :  { %s58_s13 = sshll.u32 %s1485_s12, 4  ;;  %s25_s15 = sshll.u32 %s1486_s14, 4  ;;  %s59_s13 = int_to_ptr.vmem [resolvable:$true] %s58_s13  ;;  %s26_s15 = int_to_ptr.vmem [resolvable:$true] %s25_s15 }
  0x12   :  { %s1360_s16 = scalar_lea.vmem %s59_s13, 1024  ;;  %p1365_p6 = scmp.lt.s32.totalorder %s59_s13, %s59_s13 }
  0x13   :  { %p1361_p5 = scmp.ne.s32.totalorder %s59_s13, %s1360_s16  ;;  %p1366_p7 = scmp.lt.s32.totalorder %s1360_s16, %s1360_s16 }
  0x15   :  { %p1367_p8 = por %p1366_p7, %p1365_p6 }
  0x17   :  { %p1368_p9 = pnand %p1367_p8, %p1361_p5 }
  0x19   :  { %1371 = shalt.err (!%p1368_p9)
}
  0x1a   :  { %64 = dma.hbm_to_vmem [thread:$0]  %s1767_s3, 1024, %s59_s13, [#allocation12], %s1483_s30, %s1483_s30, %s1484_s9  }
  0x1b   :  { %s1380_s1 = scalar_lea.vmem %s26_s15, 128  ;;  %p1385_p11 = scmp.lt.s32.totalorder %s26_s15, %s26_s15 }
  0x1c   :  { %p1381_p10 = scmp.ne.s32.totalorder %s26_s15, %s1380_s1  ;;  %p1386_p12 = scmp.lt.s32.totalorder %s1380_s1, %s1380_s1 }
  0x1e   :  { %p1387_p13 = por %p1386_p12, %p1385_p11 }
  0x20   :  { %p1388_p0 = pnand %p1387_p13, %p1381_p10 }
  0x22   :  { %1391 = shalt.err (!%p1388_p0)
}
  0x23   :  { %28 = dma.hbm_to_vmem [thread:$0]  %s1764_s0, 128, %s26_s15, [#allocation6]  }
  0x24   :  { %s1487_s21 = smov [#allocation10]   ;;  %s1488_s23 = smov [#allocation13]  }
  0x25   :  { %s46_s22 = sshll.u32 %s1487_s21, 4  ;;  %s72_s24 = sshll.u32 %s1488_s23, 4  ;;  %s47_s22 = int_to_ptr.vmem [resolvable:$true] %s46_s22  ;;  %s73_s24 = int_to_ptr.vmem [resolvable:$true] %s72_s24 }
  0x26   :  { %s1400_s25 = scalar_lea.vmem %s47_s22, 1024  ;;  %p1405_p2 = scmp.lt.s32.totalorder %s47_s22, %s47_s22 }
  0x27   :  { %p1401_p1 = scmp.ne.s32.totalorder %s47_s22, %s1400_s25  ;;  %p1406_p3 = scmp.lt.s32.totalorder %s1400_s25, %s1400_s25 }
  0x29   :  { %p1407_p4 = por %p1406_p3, %p1405_p2 }
  0x2b   :  { %p1408_p5 = pnand %p1407_p4, %p1401_p1 }
  0x2d   :  { %1411 = shalt.err (!%p1408_p5)
}
  0x2e   :  { %52 = dma.hbm_to_vmem [thread:$0]  %s1766_s2, 1024, %s47_s22, [#allocation9], %s1483_s30, %s1483_s30, %s1484_s9  }
  0x2f   :  { %s1420_s0 = scalar_lea.vmem %s73_s24, 1024  ;;  %p1425_p7 = scmp.lt.s32.totalorder %s73_s24, %s73_s24 }
  0x30   :  { %p1421_p6 = scmp.ne.s32.totalorder %s73_s24, %s1420_s0  ;;  %p1426_p8 = scmp.lt.s32.totalorder %s1420_s0, %s1420_s0 }
  0x32   :  { %p1427_p9 = por %p1426_p8, %p1425_p7 }
  0x34   :  { %p1428_p10 = pnand %p1427_p9, %p1421_p6 }
  0x36   :  { %1431 = shalt.err (!%p1428_p10)
}
  0x37   :  { %78 = dma.hbm_to_vmem [thread:$0]  %s1769_s5, 1024, %s73_s24, [#allocation12], %s1483_s30, %s1483_s30, %s1484_s9  }
  0x38   :  { %1472 = dma.done.wait [#allocation6], 128  }
  0x39   :  { %1473 = vsyncadd [#allocation6], 4294967168 }
  0x3a   :  { %1474 = dma.done.wait [#allocation9], 1536  }
  0x3b   :  { %1475 = vsyncadd [#allocation9], 4294965760 }
  0x3c   :  { %1476 = dma.done.wait [#allocation12], 2048  }
  0x3d   :  { %1477 = vsyncadd [#allocation12], 4294965248  ;;  %v1489_v0 = vmov 0.0   ;;  %vm1490_vm0 = vmmov 0   ;;  %v1284_v1 = vld [vmem:[#allocation10 + $0x38] sm:$0xff]   ;;  %v1286_v3 = vld [vmem:[#allocation10 + $0x30] sm:$0xff]  }
  0x3e   :  { %1087 = vmatprep.subr.bf16.mxu1 %v1489_v0  ;;  %1103 = vmatprep.mubr.msk.bf16.mxu1 %vm1490_vm0, %v1489_v0  ;;  %v1570_v2 = vld [vmem:[#allocation11 + $0x38] sm:$0xff]   ;;  %v1573_v4 = vld [vmem:[#allocation11 + $0x30] sm:$0xff]   ;;  %v1288_v5 = vld [vmem:[#allocation10 + $0x28] sm:$0xff]  }
  0x3f   :  { %1063 = vmatprep.subr.bf16.mxu0 %v1284_v1  ;;  %1088 = vmatpush3.bf16.msra.mxu1 %v1570_v2  ;;  %v1577_v6 = vld [vmem:[#allocation11 + $0x28] sm:$0xff]   ;;  %v1290_v7 = vld [vmem:[#allocation10 + $0x20] sm:$0xff]   ;;  %v1292_v9 = vld [vmem:[#allocation10 + $0x18] sm:$0xff]  }
  0x40   :  { %1064 = vmatpush3.bf16.msra.mxu0 %v1284_v1  ;;  %1089 = vmatprep.subr.bf16.mxu1 %v1489_v0  ;;  %v1581_v8 = vld [vmem:[#allocation11 + $0x20] sm:$0xff]   ;;  %v1584_v10 = vld [vmem:[#allocation11 + $0x18] sm:$0xff]   ;;  %v1294_v11 = vld [vmem:[#allocation10 + $0x10] sm:$0xff]  }
  0x41   :  { %1065 = vmatprep.subr.bf16.mxu0 %v1286_v3  ;;  %v1300_v12 = vld [vmem:[#allocation8] sm:$0xff]   ;;  %v1588_v13 = vld [vmem:[#allocation11 + $0x10] sm:$0xff]   ;;  %v1296_v14 = vld [vmem:[#allocation10 + $0x8] sm:$0xff]  }
  0x42   :  { %1079 = vmatprep.mubr.bf16.mxu0 %v1300_v12  ;;  %v1592_v15 = vld [vmem:[#allocation11 + $0x8] sm:$0xff]   ;;  %v1298_v16 = vld [vmem:[#allocation10] sm:$0xff]   ;;  %v101_v18 = vld [vmem:[#allocation5] sm:$0xff] }
  0x43   :  { %1090 = vmatpush3.bf16.msra.mxu1 %v1573_v4  ;;  %v1597_v17 = vld [vmem:[#allocation11] sm:$0xff]   ;;  %v297_v19 = vpack.c.bf16 %v101_v18, %v101_v18  ;;  %v1301_v20 = vld [vmem:[#allocation8 + $0x8] sm:$0xff]   ;;  %v1302_v21 = vld [vmem:[#allocation8 + $0x10] sm:$0xff]  }
  0x44   :  { %1066 = vmatpush3.bf16.msra.mxu0 %v1286_v3  ;;  %1091 = vmatprep.subr.bf16.mxu1 %v1489_v0  ;;  %v1303_v22 = vld [vmem:[#allocation8 + $0x18] sm:$0xff]  }
  0x45   :  { %1067 = vmatprep.subr.bf16.mxu0 %v1288_v5  ;;  %v1644_v25 = vld [vmem:[%s1768_s4] ss:$0 sm:$0xff] }
  0x47   :  { %1092 = vmatpush3.bf16.msra.mxu1 %v1577_v6 }
  0x48   :  { %1068 = vmatpush3.bf16.msra.mxu0 %v1288_v5  ;;  %1093 = vmatprep.subr.bf16.mxu1 %v1489_v0 }
  0x49   :  { %1069 = vmatprep.subr.bf16.mxu0 %v1290_v7 }
  0x4b   :  { %1094 = vmatpush3.bf16.msra.mxu1 %v1581_v8 }
  0x4c   :  { %1070 = vmatpush3.bf16.msra.mxu0 %v1290_v7  ;;  %1095 = vmatprep.subr.bf16.mxu1 %v1489_v0 }
  0x4d   :  { %1071 = vmatprep.subr.bf16.mxu0 %v1292_v9 }
  0x4f   :  { %1096 = vmatpush3.bf16.msra.mxu1 %v1584_v10 }
  0x50   :  { %1072 = vmatpush3.bf16.msra.mxu0 %v1292_v9  ;;  %1097 = vmatprep.subr.bf16.mxu1 %v1489_v0 }
  0x51   :  { %1073 = vmatprep.subr.bf16.mxu0 %v1294_v11 }
  0x53   :  { %1098 = vmatpush3.bf16.msra.mxu1 %v1588_v13 }
  0x54   :  { %1074 = vmatpush3.bf16.msra.mxu0 %v1294_v11  ;;  %1099 = vmatprep.subr.bf16.mxu1 %v1489_v0 }
  0x55   :  { %1075 = vmatprep.subr.bf16.mxu0 %v1296_v14 }
  0x57   :  { %1100 = vmatpush3.bf16.msra.mxu1 %v1592_v15 }
  0x58   :  { %1076 = vmatpush3.bf16.msra.mxu0 %v1296_v14  ;;  %1101 = vmatprep.subr.bf16.mxu1 %v1489_v0 }
  0x59   :  { %1077 = vmatprep.subr.bf16.mxu0 %v1298_v16 }
  0x5b   :  { %1102 = vmatpush3.bf16.msra.mxu1 %v1597_v17 }
  0x5c   :  { %1078 = vmatpush3.bf16.msra.mxu0 %v1298_v16  ;;  %1127 = vmatprep.subr.bf16.mxu1 %v1489_v0 }
  0x5d   :  { %1107 = vmatprep.subr.bf16.mxu0 %v1489_v0 }
  0x5e   :  { %1104 = vmatmul.mubr.bf16.vlgmr.msra.gmra.mxu1 %v297_v19 }
  0x5f   :  { %1080 = vmatmul.mubr.bf16.vlgmr.msra.gmra.mxu0 %v1301_v20  ;;  %1128 = vmatpush3.bf16.msra.mxu1 %v1570_v2  ;;  %v1306_v20 = vld [vmem:[#allocation13 + $0x30] sm:$0xff]  }
  0x60   :  { %1108 = vmatpush3.bf16.msra.mxu0 %v1570_v2  ;;  %1129 = vmatprep.subr.bf16.mxu1 %v1489_v0 }
  0x61   :  { %1109 = vmatprep.subr.bf16.mxu0 %v1489_v0  ;;  %1143 = vmatprep.mubr.msk.bf16.mxu1 %vm1490_vm0, %v1489_v0 }
  0x62   :  { %1083 = vmatprep.mubr.bf16.mxu0 %v1302_v21 }
  0x63   :  { %1130 = vmatpush3.bf16.msra.mxu1 %v1573_v4 }
  0x64   :  { %1110 = vmatpush3.bf16.msra.mxu0 %v1573_v4  ;;  %1131 = vmatprep.subr.bf16.mxu1 %v1489_v0 }
  0x65   :  { %1111 = vmatprep.subr.bf16.mxu0 %v1489_v0 }
  0x67   :  { %1132 = vmatpush3.bf16.msra.mxu1 %v1577_v6  ;;  %1084 = vmatmul.mubr.bf16.gmra.mxu0 %v1303_v22  ;;  %v1310_v22 = vld [vmem:[#allocation13 + $0x10] sm:$0xff]  }
  0x68   :  { %1112 = vmatpush3.bf16.msra.mxu0 %v1577_v6  ;;  %1133 = vmatprep.subr.bf16.mxu1 %v1489_v0 }
  0x69   :  { %1113 = vmatprep.subr.bf16.mxu0 %v1489_v0  ;;  %1123 = vmatprep.mubr.msk.bf16.mxu0 %vm1490_vm0, %v1489_v0 }
  0x6b   :  { %1134 = vmatpush3.bf16.msra.mxu1 %v1581_v8 }
  0x6c   :  { %1114 = vmatpush3.bf16.msra.mxu0 %v1581_v8  ;;  %1135 = vmatprep.subr.bf16.mxu1 %v1489_v0 }
  0x6d   :  { %1115 = vmatprep.subr.bf16.mxu0 %v1489_v0 }
  0x6f   :  { %1136 = vmatpush3.bf16.msra.mxu1 %v1584_v10 }
  0x70   :  { %1116 = vmatpush3.bf16.msra.mxu0 %v1584_v10  ;;  %1137 = vmatprep.subr.bf16.mxu1 %v1489_v0 }
  0x71   :  { %1117 = vmatprep.subr.bf16.mxu0 %v1489_v0 }
  0x73   :  { %1138 = vmatpush3.bf16.msra.mxu1 %v1588_v13 }
  0x74   :  { %1118 = vmatpush3.bf16.msra.mxu0 %v1588_v13  ;;  %1139 = vmatprep.subr.bf16.mxu1 %v1489_v0 }
  0x75   :  { %1119 = vmatprep.subr.bf16.mxu0 %v1489_v0 }
  0x77   :  { %1140 = vmatpush3.bf16.msra.mxu1 %v1592_v15 }
  0x78   :  { %1120 = vmatpush3.bf16.msra.mxu0 %v1592_v15  ;;  %1141 = vmatprep.subr.bf16.mxu1 %v1489_v0 }
  0x79   :  { %1121 = vmatprep.subr.bf16.mxu0 %v1489_v0 }
  0x7b   :  { %1142 = vmatpush3.bf16.msra.mxu1 %v1597_v17 }
  0x7c   :  { %1122 = vmatpush3.bf16.msra.mxu0 %v1597_v17  ;;  %1167 = vmatprep.subr.bf16.mxu1 %v1489_v0 }
  0x7d   :  { %1147 = vmatprep.subr.bf16.mxu0 %v1489_v0 }
 0x11e   :  { %v380_v23 = vpop.f32.mrf.mxu1 }
 0x11f   :  { %v1639_v24 = vpop.f32.mrf.mxu0 }
 0x120   :  { %v1105_v26 = vpop.f32.mrf.mxu1  ;;  %v249_v48 = vadd.f32 %v1639_v24, %v1644_v25  ;;  %v1312_v24 = vld [vmem:[#allocation13] sm:$0xff]  }
 0x121   :  { %v240_v27 = vpop.f32.mrf.mxu0 }
 0x122   :  { %v241_v28 = vadd.f32 %v1644_v25, %v240_v27  ;;  %v383_v29 = vpop.f32.mrf.mxu1 }
 0x123   :  { %v1082_v34 = vpop.f32.mrf.mxu0 }
 0x124   :  { %v386_v30 = vadd.f32 %v380_v23, %v241_v28  ;;  %v1106_v31 = vpop.f32.mrf.mxu1  ;;  %v252_v56 = vadd.f32 %v1082_v34, %v1644_v25  ;;  %v1311_v23 = vld [vmem:[#allocation13 + $0x8] sm:$0xff]  }
 0x125   :  { %v243_v35 = vpop.f32.mrf.mxu0 }
 0x126   :  { %1316 = vtanh.f32 %v386_v30  ;;  %v244_v40 = vadd.f32 %v1644_v25, %v243_v35 }
 0x127   :  { %v1665_v36 = vpop.f32.mrf.mxu0 }
 0x128   :  { %v265_v28 = vadd.f32 %v1665_v36, %v1644_v25 }
 0x129   :  { %v1667_v37 = vpop.f32.mrf.mxu0 }
 0x12a   :  { %v257_v1 = vadd.f32 %v1644_v25, %v1667_v37  ;;  %v954_v37 = vld [vmem:[%s1770_s6] ss:$0 sm:$0xff]  ;;  %s1491_s6 = smov [#allocation15]  }
 0x12b   :  { %v1669_v38 = vpop.f32.mrf.mxu0  ;;  %s918_s30 = sshll.u32 %s1491_s6, 4  ;;  %s919_s30 = int_to_ptr.vmem [resolvable:$true] %s918_s30 }
 0x12c   :  { %s1432_s9 = scalar_lea.vmem %s919_s30, 128  ;;  %p1437_p12 = scmp.lt.s32.totalorder %s919_s30, %s919_s30 }
 0x12d   :  { %v1671_v39 = vpop.f32.mrf.mxu0  ;;  %p1433_p11 = scmp.ne.s32.totalorder %s919_s30, %s1432_s9  ;;  %p1438_p13 = scmp.lt.s32.totalorder %s1432_s9, %s1432_s9 }
 0x12f   :  { %p1439_p0 = por %p1438_p13, %p1437_p12 }
 0x131   :  { %p1440_p1 = pnand %p1439_p0, %p1433_p11 }
 0x133   :  { %v1317_v32 = vpop.eup %1316 }
 0x134   :  { %v388_v33 = vpack.c.bf16 %v1317_v32, %v1317_v32 }
 0x136   :  { %389 = vst [vmem:[#allocation3] sm:$0xf] %v388_v33  ;;  %1124 = vmatmul.mubr.bf16.vlgmr.msra.gmra.mxu0 %v388_v33 }
 0x137   :  { %1148 = vmatpush3.bf16.msra.mxu0 %v1570_v2  ;;  %1163 = vmatprep.mubr.msk.bf16.mxu0 %vm1490_vm0, %v1489_v0 }
 0x138   :  { %1149 = vmatprep.subr.bf16.mxu0 %v1489_v0 }
 0x13b   :  { %1150 = vmatpush3.bf16.msra.mxu0 %v1573_v4 }
 0x13c   :  { %1151 = vmatprep.subr.bf16.mxu0 %v1489_v0 }
 0x13f   :  { %1152 = vmatpush3.bf16.msra.mxu0 %v1577_v6 }
 0x140   :  { %1153 = vmatprep.subr.bf16.mxu0 %v1489_v0 }
 0x143   :  { %1154 = vmatpush3.bf16.msra.mxu0 %v1581_v8 }
 0x144   :  { %1155 = vmatprep.subr.bf16.mxu0 %v1489_v0 }
 0x147   :  { %1156 = vmatpush3.bf16.msra.mxu0 %v1584_v10 }
 0x148   :  { %1157 = vmatprep.subr.bf16.mxu0 %v1489_v0 }
 0x14b   :  { %1158 = vmatpush3.bf16.msra.mxu0 %v1588_v13 }
 0x14c   :  { %1159 = vmatprep.subr.bf16.mxu0 %v1489_v0 }
 0x14f   :  { %1160 = vmatpush3.bf16.msra.mxu0 %v1592_v15 }
 0x150   :  { %1161 = vmatprep.subr.bf16.mxu0 %v1489_v0 }
 0x153   :  { %1162 = vmatpush3.bf16.msra.mxu0 %v1597_v17 }
 0x154   :  { %1187 = vmatprep.subr.bf16.mxu0 %v1489_v0 }
 0x1f6   :  { %v426_v41 = vpop.f32.mrf.mxu0 }
 0x1f7   :  { %v432_v42 = vadd.f32 %v426_v41, %v244_v40 }
 0x1f8   :  { %v1125_v43 = vpop.f32.mrf.mxu0 }
 0x1f9   :  { %1318 = vtanh.f32 %v432_v42 }
 0x1fa   :  { %v429_v44 = vpop.f32.mrf.mxu0 }
 0x1fc   :  { %v1126_v45 = vpop.f32.mrf.mxu0 }
 0x206   :  { %v1319_v46 = vpop.eup %1318 }
 0x207   :  { %v434_v47 = vpack.c.bf16 %v1319_v46, %v1319_v46  ;;  %v268_v46 = vadd.f32 %v1669_v38, %v1644_v25 }
 0x209   :  { %436 = vst [vmem:[#allocation3 + $0x4] sm:$0xf] %v434_v47  ;;  %1144 = vmatmul.mubr.bf16.vlgmr.msra.gmra.mxu1 %v434_v47 }
 0x20a   :  { %1168 = vmatpush3.bf16.msra.mxu1 %v1570_v2  ;;  %1183 = vmatprep.mubr.msk.bf16.mxu1 %vm1490_vm0, %v1489_v0 }
 0x20b   :  { %1169 = vmatprep.subr.bf16.mxu1 %v1489_v0 }
 0x20e   :  { %1170 = vmatpush3.bf16.msra.mxu1 %v1573_v4 }
 0x20f   :  { %1171 = vmatprep.subr.bf16.mxu1 %v1489_v0 }
 0x210   :  { %v1305_v21 = vld [vmem:[#allocation3] sm:$0xff]  }
 0x212   :  { %1172 = vmatpush3.bf16.msra.mxu1 %v1577_v6 }
 0x213   :  { %1173 = vmatprep.subr.bf16.mxu1 %v1489_v0 }
 0x216   :  { %1174 = vmatpush3.bf16.msra.mxu1 %v1581_v8 }
 0x217   :  { %1175 = vmatprep.subr.bf16.mxu1 %v1489_v0 }
 0x21a   :  { %1176 = vmatpush3.bf16.msra.mxu1 %v1584_v10 }
 0x21b   :  { %1177 = vmatprep.subr.bf16.mxu1 %v1489_v0 }
 0x21e   :  { %1178 = vmatpush3.bf16.msra.mxu1 %v1588_v13 }
 0x21f   :  { %1179 = vmatprep.subr.bf16.mxu1 %v1489_v0 }
 0x222   :  { %1180 = vmatpush3.bf16.msra.mxu1 %v1592_v15 }
 0x223   :  { %1181 = vmatprep.subr.bf16.mxu1 %v1489_v0 }
 0x226   :  { %1182 = vmatpush3.bf16.msra.mxu1 %v1597_v17 }
 0x227   :  { %1207 = vmatprep.subr.bf16.mxu1 %v1489_v0 }
 0x2c9   :  { %v473_v49 = vpop.f32.mrf.mxu1 }
 0x2ca   :  { %v479_v50 = vadd.f32 %v473_v49, %v249_v48 }
 0x2cb   :  { %v1145_v51 = vpop.f32.mrf.mxu1 }
 0x2cc   :  { %1320 = vtanh.f32 %v479_v50 }
 0x2cd   :  { %v476_v52 = vpop.f32.mrf.mxu1 }
 0x2cf   :  { %v1146_v53 = vpop.f32.mrf.mxu1 }
 0x2d9   :  { %v1321_v54 = vpop.eup %1320 }
 0x2da   :  { %v481_v55 = vpack.c.bf16 %v1321_v54, %v1321_v54 }
 0x2dc   :  { %483 = vst [vmem:[#allocation3 + $0x8] sm:$0xf] %v481_v55  ;;  %1164 = vmatmul.mubr.bf16.vlgmr.msra.gmra.mxu0 %v481_v55 }
 0x2dd   :  { %1188 = vmatpush3.bf16.msra.mxu0 %v1570_v2  ;;  %1203 = vmatprep.mubr.msk.bf16.mxu0 %vm1490_vm0, %v1489_v0 }
 0x2de   :  { %1189 = vmatprep.subr.bf16.mxu0 %v1489_v0 }
 0x2e1   :  { %1190 = vmatpush3.bf16.msra.mxu0 %v1573_v4 }
 0x2e2   :  { %1191 = vmatprep.subr.bf16.mxu0 %v1489_v0 }
 0x2e5   :  { %1192 = vmatpush3.bf16.msra.mxu0 %v1577_v6 }
 0x2e6   :  { %1193 = vmatprep.subr.bf16.mxu0 %v1489_v0 }
 0x2e9   :  { %1194 = vmatpush3.bf16.msra.mxu0 %v1581_v8 }
 0x2ea   :  { %1195 = vmatprep.subr.bf16.mxu0 %v1489_v0 }
 0x2ed   :  { %1196 = vmatpush3.bf16.msra.mxu0 %v1584_v10 }
 0x2ee   :  { %1197 = vmatprep.subr.bf16.mxu0 %v1489_v0 }
 0x2f1   :  { %1198 = vmatpush3.bf16.msra.mxu0 %v1588_v13 }
 0x2f2   :  { %1199 = vmatprep.subr.bf16.mxu0 %v1489_v0 }
 0x2f5   :  { %1200 = vmatpush3.bf16.msra.mxu0 %v1592_v15 }
 0x2f6   :  { %1201 = vmatprep.subr.bf16.mxu0 %v1489_v0 }
 0x2f9   :  { %1202 = vmatpush3.bf16.msra.mxu0 %v1597_v17 }
 0x2fa   :  { %1227 = vmatprep.subr.bf16.mxu0 %v1489_v0 }
 0x39c   :  { %v520_v57 = vpop.f32.mrf.mxu0 }
 0x39d   :  { %v526_v58 = vadd.f32 %v520_v57, %v252_v56 }
 0x39e   :  { %v1165_v59 = vpop.f32.mrf.mxu0 }
 0x39f   :  { %1322 = vtanh.f32 %v526_v58 }
 0x3a0   :  { %v523_v60 = vpop.f32.mrf.mxu0 }
 0x3a2   :  { %v1166_v61 = vpop.f32.mrf.mxu0 }
 0x3ac   :  { %v1323_v62 = vpop.eup %1322 }
 0x3ad   :  { %v528_v63 = vpack.c.bf16 %v1323_v62, %v1323_v62 }
 0x3af   :  { %530 = vst [vmem:[#allocation3 + $0xc] sm:$0xf] %v528_v63  ;;  %1184 = vmatmul.mubr.bf16.vlgmr.msra.gmra.mxu1 %v528_v63 }
 0x3b0   :  { %1208 = vmatpush3.bf16.msra.mxu1 %v1570_v2  ;;  %1223 = vmatprep.mubr.msk.bf16.mxu1 %vm1490_vm0, %v1489_v0 }
 0x3b1   :  { %1209 = vmatprep.subr.bf16.mxu1 %v1489_v0 }
 0x3b4   :  { %1210 = vmatpush3.bf16.msra.mxu1 %v1573_v4 }
 0x3b5   :  { %1211 = vmatprep.subr.bf16.mxu1 %v1489_v0 }
 0x3b6   :  { %v1313_v26 = vld [vmem:[#allocation3 + $0x8] sm:$0xff]  }
 0x3b8   :  { %1212 = vmatpush3.bf16.msra.mxu1 %v1577_v6 }
 0x3b9   :  { %1213 = vmatprep.subr.bf16.mxu1 %v1489_v0 }
 0x3bc   :  { %1214 = vmatpush3.bf16.msra.mxu1 %v1581_v8 }
 0x3bd   :  { %1215 = vmatprep.subr.bf16.mxu1 %v1489_v0 }
 0x3c0   :  { %1216 = vmatpush3.bf16.msra.mxu1 %v1584_v10 }
 0x3c1   :  { %1217 = vmatprep.subr.bf16.mxu1 %v1489_v0 }
 0x3c4   :  { %1218 = vmatpush3.bf16.msra.mxu1 %v1588_v13 }
 0x3c5   :  { %1219 = vmatprep.subr.bf16.mxu1 %v1489_v0 }
 0x3c8   :  { %1220 = vmatpush3.bf16.msra.mxu1 %v1592_v15 }
 0x3c9   :  { %1221 = vmatprep.subr.bf16.mxu1 %v1489_v0 }
 0x3cc   :  { %1222 = vmatpush3.bf16.msra.mxu1 %v1597_v17 }
 0x46f   :  { %v567_v3 = vpop.f32.mrf.mxu1 }
 0x470   :  { %v573_v5 = vadd.f32 %v567_v3, %v257_v1 }
 0x471   :  { %v1185_v7 = vpop.f32.mrf.mxu1 }
 0x472   :  { %1324 = vtanh.f32 %v573_v5 }
 0x473   :  { %v570_v9 = vpop.f32.mrf.mxu1 }
 0x475   :  { %v1186_v11 = vpop.f32.mrf.mxu1 }
 0x47f   :  { %v1325_v12 = vpop.eup %1324 }
 0x480   :  { %v575_v14 = vpack.c.bf16 %v1325_v12, %v1325_v12 }
 0x482   :  { %577 = vst [vmem:[#allocation3 + $0x10] sm:$0xf] %v575_v14  ;;  %1204 = vmatmul.mubr.bf16.vlgmr.msra.gmra.mxu0 %v575_v14 }
 0x483   :  { %1228 = vmatpush3.bf16.msra.mxu0 %v1570_v2  ;;  %1243 = vmatprep.mubr.msk.bf16.mxu0 %vm1490_vm0, %v1489_v0  ;;  %v1304_v2 = vld [vmem:[#allocation13 + $0x38] sm:$0xff]  }
 0x484   :  { %1229 = vmatprep.subr.bf16.mxu0 %v1489_v0  ;;  %1247 = vmatprep.subr.bf16.mxu1 %v1304_v2 }
 0x487   :  { %1230 = vmatpush3.bf16.msra.mxu0 %v1573_v4  ;;  %v260_v4 = vadd.f32 %v1644_v25, %v1671_v39 }
 0x488   :  { %1231 = vmatprep.subr.bf16.mxu0 %v1489_v0 }
 0x48b   :  { %1232 = vmatpush3.bf16.msra.mxu0 %v1577_v6 }
 0x48c   :  { %1233 = vmatprep.subr.bf16.mxu0 %v1489_v0 }
 0x48f   :  { %1234 = vmatpush3.bf16.msra.mxu0 %v1581_v8 }
 0x490   :  { %1235 = vmatprep.subr.bf16.mxu0 %v1489_v0 }
 0x493   :  { %1236 = vmatpush3.bf16.msra.mxu0 %v1584_v10 }
 0x494   :  { %1237 = vmatprep.subr.bf16.mxu0 %v1489_v0 }
 0x497   :  { %1238 = vmatpush3.bf16.msra.mxu0 %v1588_v13 }
 0x498   :  { %1239 = vmatprep.subr.bf16.mxu0 %v1489_v0 }
 0x49b   :  { %1240 = vmatpush3.bf16.msra.mxu0 %v1592_v15  ;;  %v1308_v15 = vld [vmem:[#allocation13 + $0x20] sm:$0xff]  }
 0x49c   :  { %1241 = vmatprep.subr.bf16.mxu0 %v1489_v0  ;;  %v1307_v0 = vld [vmem:[#allocation13 + $0x28] sm:$0xff]  }
 0x49f   :  { %1242 = vmatpush3.bf16.msra.mxu0 %v1597_v17  ;;  %v1309_v17 = vld [vmem:[#allocation13 + $0x18] sm:$0xff]  }
 0x542   :  { %v614_v6 = vpop.f32.mrf.mxu0 }
 0x543   :  { %v620_v8 = vadd.f32 %v614_v6, %v260_v4 }
 0x544   :  { %v1205_v10 = vpop.f32.mrf.mxu0 }
 0x545   :  { %1326 = vtanh.f32 %v620_v8 }
 0x546   :  { %v617_v16 = vpop.f32.mrf.mxu0 }
 0x548   :  { %v1206_v18 = vpop.f32.mrf.mxu0 }
 0x552   :  { %v1327_v13 = vpop.eup %1326 }
 0x553   :  { %v622_v19 = vpack.c.bf16 %v1327_v13, %v1327_v13 }
 0x555   :  { %624 = vst [vmem:[#allocation3 + $0x14] sm:$0xf] %v622_v19  ;;  %1224 = vmatmul.mubr.bf16.vlgmr.msra.gmra.mxu1 %v622_v19 }
 0x556   :  { %1248 = vmatpush3.bf16.msra.mxu1 %v1304_v2  ;;  %1263 = vmatprep.mubr.bf16.mxu1 %v1305_v21 }
 0x557   :  { %1249 = vmatprep.subr.bf16.mxu1 %v1306_v20 }
 0x55a   :  { %1250 = vmatpush3.bf16.msra.mxu1 %v1306_v20 }
 0x55b   :  { %1251 = vmatprep.subr.bf16.mxu1 %v1307_v0 }
 0x55c   :  { %v1314_v27 = vld [vmem:[#allocation3 + $0x10] sm:$0xff]  }
 0x55e   :  { %1252 = vmatpush3.bf16.msra.mxu1 %v1307_v0 }
 0x55f   :  { %1253 = vmatprep.subr.bf16.mxu1 %v1308_v15 }
 0x562   :  { %1254 = vmatpush3.bf16.msra.mxu1 %v1308_v15 }
 0x563   :  { %1255 = vmatprep.subr.bf16.mxu1 %v1309_v17 }
 0x566   :  { %1256 = vmatpush3.bf16.msra.mxu1 %v1309_v17 }
 0x567   :  { %1257 = vmatprep.subr.bf16.mxu1 %v1310_v22 }
 0x56a   :  { %1258 = vmatpush3.bf16.msra.mxu1 %v1310_v22 }
 0x56b   :  { %1259 = vmatprep.subr.bf16.mxu1 %v1311_v23 }
 0x56e   :  { %1260 = vmatpush3.bf16.msra.mxu1 %v1311_v23 }
 0x56f   :  { %1261 = vmatprep.subr.bf16.mxu1 %v1312_v24 }
 0x572   :  { %1262 = vmatpush3.bf16.msra.mxu1 %v1312_v24 }
 0x575   :  { %1264 = vmatmul.mubr.bf16.vlgmr.msra.gmra.mxu1 %v1313_v26 }
 0x576   :  { %1267 = vmatprep.mubr.bf16.mxu1 %v1314_v27 }
 0x615   :  { %v661_v29 = vpop.f32.mrf.mxu1 }
 0x616   :  { %v667_v30 = vadd.f32 %v661_v29, %v265_v28 }
 0x617   :  { %v1225_v31 = vpop.f32.mrf.mxu1 }
 0x618   :  { %1328 = vtanh.f32 %v667_v30 }
 0x619   :  { %v664_v32 = vpop.f32.mrf.mxu1 }
 0x61b   :  { %v1226_v33 = vpop.f32.mrf.mxu1 }
 0x625   :  { %v1329_v34 = vpop.eup %1328 }
 0x626   :  { %v669_v35 = vpack.c.bf16 %v1329_v34, %v1329_v34 }
 0x628   :  { %671 = vst [vmem:[#allocation3 + $0x18] sm:$0xf] %v669_v35  ;;  %1244 = vmatmul.mubr.bf16.vlgmr.msra.gmra.mxu0 %v669_v35 }
 0x635   :  { %v1265_v39 = vpop.f32.mrf.mxu1 }
 0x636   :  { %v866_v40 = vadd.f32 %v1265_v39, %v954_v37 }
 0x637   :  { %v857_v41 = vpop.f32.mrf.mxu1 }
 0x638   :  { %890 = vst [vmem:[#allocation14 + $0x10] sm:$0xff] %v866_v40  ;;  %v858_v42 = vadd.f32 %v954_v37, %v857_v41 }
 0x639   :  { %v1266_v36 = vpop.f32.mrf.mxu1 }
 0x63a   :  { %888 = vst [vmem:[#allocation14] sm:$0xff] %v858_v42  ;;  %v869_v43 = vadd.f32 %v1266_v36, %v954_v37 }
 0x63b   :  { %v860_v44 = vpop.f32.mrf.mxu1 }
 0x63c   :  { %891 = vst [vmem:[#allocation14 + $0x18] sm:$0xff] %v869_v43  ;;  %v861_v45 = vadd.f32 %v954_v37, %v860_v44 }
 0x63e   :  { %889 = vst [vmem:[#allocation14 + $0x8] sm:$0xff] %v861_v45 }
 0x6e8   :  { %v708_v47 = vpop.f32.mrf.mxu0 }
 0x6e9   :  { %v714_v48 = vadd.f32 %v708_v47, %v268_v46 }
 0x6ea   :  { %v1245_v49 = vpop.f32.mrf.mxu0 }
 0x6eb   :  { %1330 = vtanh.f32 %v714_v48 }
 0x6ec   :  { %v711_v50 = vpop.f32.mrf.mxu0 }
 0x6ee   :  { %v1246_v51 = vpop.f32.mrf.mxu0 }
 0x6f8   :  { %v1331_v52 = vpop.eup %1330 }
 0x6f9   :  { %v716_v53 = vpack.c.bf16 %v1331_v52, %v1331_v52  ;;  %899 = vst [vmem:[#allocation15] sm:$0xff] %v1331_v52 }
 0x6fb   :  { %718 = vst [vmem:[#allocation3 + $0x1c] sm:$0xf] %v716_v53 }
 0x702   :  { %v1315_v54 = vld [vmem:[#allocation3 + $0x18] sm:$0xff]  }
 0x703   :  { %1268 = vmatmul.mubr.bf16.gmra.mxu1 %v1315_v54 }
 0x704   :  { %1443 = shalt.err (!%p1440_p1)
}
 0x705   :  { %921 = dma.vmem_to_hbm [thread:$0]  %s919_s30, 128, %s1772_s8, [#allocation16]  }
 0x706   :  { %s1492_s12 = smov [#allocation14]  }
 0x707   :  { %s905_s13 = sshll.u32 %s1492_s12, 4  ;;  %s906_s13 = int_to_ptr.vmem [resolvable:$true] %s905_s13 }
 0x708   :  { %s1452_s14 = scalar_lea.vmem %s906_s13, 1024  ;;  %p1457_p3 = scmp.lt.s32.totalorder %s906_s13, %s906_s13 }
 0x709   :  { %p1453_p2 = scmp.ne.s32.totalorder %s906_s13, %s1452_s14  ;;  %p1458_p4 = scmp.lt.s32.totalorder %s1452_s14, %s1452_s14 }
 0x70b   :  { %p1459_p5 = por %p1458_p4, %p1457_p3 }
 0x70d   :  { %p1460_p6 = pnand %p1459_p5, %p1453_p2 }
 0x7c3   :  { %v1269_v25 = vpop.f32.mrf.mxu1 }
 0x7c4   :  { %v882_v38 = vadd.f32 %v1269_v25, %v954_v37 }
 0x7c5   :  { %v873_v55 = vpop.f32.mrf.mxu1 }
 0x7c6   :  { %894 = vst [vmem:[#allocation14 + $0x30] sm:$0xff] %v882_v38  ;;  %v874_v56 = vadd.f32 %v954_v37, %v873_v55 }
 0x7c7   :  { %v1270_v57 = vpop.f32.mrf.mxu1 }
 0x7c8   :  { %892 = vst [vmem:[#allocation14 + $0x20] sm:$0xff] %v874_v56  ;;  %v885_v58 = vadd.f32 %v1270_v57, %v954_v37 }
 0x7c9   :  { %v876_v59 = vpop.f32.mrf.mxu1 }
 0x7ca   :  { %895 = vst [vmem:[#allocation14 + $0x38] sm:$0xff] %v885_v58  ;;  %v877_v60 = vadd.f32 %v954_v37, %v876_v59 }
 0x7cc   :  { %893 = vst [vmem:[#allocation14 + $0x28] sm:$0xff] %v877_v60 }
 0x7cd   :  { %1463 = shalt.err (!%p1460_p6)
}
 0x7ce   :  { %s1493_s8 = smov 128   ;;  %s1494_s15 = smov 8  }
 0x7cf   :  { %911 = dma.vmem_to_hbm [thread:$0]  %s906_s13, 1024, %s1771_s7, [#allocation7], %s1493_s8, %s1493_s8, %s1494_s15  }
 0x7d0   :  { %1478 = dma.done.wait [#allocation7], 1024  }
 0x7d1   :  { %1479 = vsyncadd [#allocation7], 4294966272 }
 0x7d2   :  { %1480 = dma.done.wait [#allocation16], 128  }
 0x7d3   :  { %1481 = vsyncadd [#allocation16], 4294967168 }
 0x7d4   :  { %928 = vsyncpa [#allocation6], 1 }
 0x7d5   :  { %929 = vsyncpa [#allocation9], 1 }
 0x7d6   :  { %930 = vsyncpa [#allocation12], 1 }
 0x7d7   :  { %931 = vsyncpa [#allocation7], 1 }
 0x7d8   :  { %932 = vsyncpa [#allocation16], 1 }

// kernel: tpu_custom_call.1
= control target key start
LH: loop header
LB: loop body
LE: loop exit
PB: predicated region body
PF: predicated region fallthrough
CT: control target
= control target key end

     0   :  { %14 = vsyncpa [#allocation6], 0  ;;  %s1764_s0 = inlined_call_operand.hbm [shape: f32[8,128], index: 0, kind: input, shape index: {}]   ;;  %s1765_s1 = inlined_call_operand.hbm [shape: bf16[8,8,128], index: 1, kind: input, shape index: {}]   ;;  %s1766_s2 = inlined_call_operand.hbm [shape: bf16[128,128], index: 2, kind: input, shape index: {}]   ;;  %s1767_s3 = inlined_call_operand.hbm [shape: bf16[128,128], index: 3, kind: input, shape index: {}]   ;;  %s1768_s4 = inlined_call_operand.vmem [shape: f32[1,128], index: 4, kind: input, shape index: {}]   ;;  %s1769_s5 = inlined_call_operand.hbm [shape: bf16[128,128], index: 5, kind: input, shape index: {}]   ;;  %s1770_s6 = inlined_call_operand.vmem [shape: f32[1,128], index: 6, kind: input, shape index: {}]   ;;  %s1771_s7 = inlined_call_operand.hbm [shape: f32[8,8,128], index: 7, kind: output, shape index: {0}]   ;;  %s1772_s8 = inlined_call_operand.hbm [shape: f32[8,128], index: 8, kind: output, shape index: {1}]  }
   0x1   :  { %15 = vsyncpa [#allocation9], 0 }
   0x2   :  { %16 = vsyncpa [#allocation12], 0 }
   0x3   :  { %17 = vsyncpa [#allocation7], 0 }
   0x4   :  { %18 = vsyncpa [#allocation16], 0  ;;  %s1482_s27 = smov [#allocation8]  }
   0x5   :  { %s34_s28 = sshll.u32 %s1482_s27, 4  ;;  %s35_s28 = int_to_ptr.vmem [resolvable:$true] %s34_s28 }
   0x6   :  { %s1340_s29 = scalar_lea.vmem %s35_s28, 512  ;;  %p1345_p1 = scmp.lt.s32.totalorder %s35_s28, %s35_s28 }
   0x7   :  { %p1341_p0 = scmp.ne.s32.totalorder %s35_s28, %s1340_s29  ;;  %p1346_p2 = scmp.lt.s32.totalorder %s1340_s29, %s1340_s29 }
   0x9   :  { %p1347_p3 = por %p1346_p2, %p1345_p1 }
   0xb   :  { %p1348_p4 = pnand %p1347_p3, %p1341_p0 }
   0xd   :  { %1351 = shalt.err (!%p1348_p4)
}
   0xe   :  { %s1483_s30 = smov 64   ;;  %s1484_s9 = smov 4  }
   0xf   :  { %40 = dma.hbm_to_vmem [thread:$0]  %s1765_s1, 512, %s35_s28, [#allocation9], %s1483_s30, %s1483_s30, %s1484_s9  }
  0x10   :  { %s1485_s12 = smov [#allocation11]   ;;  %s1486_s14 = smov [#allocation5]  }
  0x11   :  { %s58_s13 = sshll.u32 %s1485_s12, 4  ;;  %s25_s15 = sshll.u32 %s1486_s14, 4  ;;  %s59_s13 = int_to_ptr.vmem [resolvable:$true] %s58_s13  ;;  %s26_s15 = int_to_ptr.vmem [resolvable:$true] %s25_s15 }
  0x12   :  { %s1360_s16 = scalar_lea.vmem %s59_s13, 1024  ;;  %p1365_p6 = scmp.lt.s32.totalorder %s59_s13, %s59_s13 }
  0x13   :  { %p1361_p5 = scmp.ne.s32.totalorder %s59_s13, %s1360_s16  ;;  %p1366_p7 = scmp.lt.s32.totalorder %s1360_s16, %s1360_s16 }
  0x15   :  { %p1367_p8 = por %p1366_p7, %p1365_p6 }
  0x17   :  { %p1368_p9 = pnand %p1367_p8, %p1361_p5 }
  0x19   :  { %1371 = shalt.err (!%p1368_p9)
}
  0x1a   :  { %64 = dma.hbm_to_vmem [thread:$0]  %s1767_s3, 1024, %s59_s13, [#allocation12], %s1483_s30, %s1483_s30, %s1484_s9  }
  0x1b   :  { %s1380_s1 = scalar_lea.vmem %s26_s15, 128  ;;  %p1385_p11 = scmp.lt.s32.totalorder %s26_s15, %s26_s15 }
  0x1c   :  { %p1381_p10 = scmp.ne.s32.totalorder %s26_s15, %s1380_s1  ;;  %p1386_p12 = scmp.lt.s32.totalorder %s1380_s1, %s1380_s1 }
  0x1e   :  { %p1387_p13 = por %p1386_p12, %p1385_p11 }
  0x20   :  { %p1388_p0 = pnand %p1387_p13, %p1381_p10 }
  0x22   :  { %1391 = shalt.err (!%p1388_p0)
}
  0x23   :  { %28 = dma.hbm_to_vmem [thread:$0]  %s1764_s0, 128, %s26_s15, [#allocation6]  }
  0x24   :  { %s1487_s21 = smov [#allocation10]   ;;  %s1488_s23 = smov [#allocation13]  }
  0x25   :  { %s46_s22 = sshll.u32 %s1487_s21, 4  ;;  %s72_s24 = sshll.u32 %s1488_s23, 4  ;;  %s47_s22 = int_to_ptr.vmem [resolvable:$true] %s46_s22  ;;  %s73_s24 = int_to_ptr.vmem [resolvable:$true] %s72_s24 }
  0x26   :  { %s1400_s25 = scalar_lea.vmem %s47_s22, 1024  ;;  %p1405_p2 = scmp.lt.s32.totalorder %s47_s22, %s47_s22 }
  0x27   :  { %p1401_p1 = scmp.ne.s32.totalorder %s47_s22, %s1400_s25  ;;  %p1406_p3 = scmp.lt.s32.totalorder %s1400_s25, %s1400_s25 }
  0x29   :  { %p1407_p4 = por %p1406_p3, %p1405_p2 }
  0x2b   :  { %p1408_p5 = pnand %p1407_p4, %p1401_p1 }
  0x2d   :  { %1411 = shalt.err (!%p1408_p5)
}
  0x2e   :  { %52 = dma.hbm_to_vmem [thread:$0]  %s1766_s2, 1024, %s47_s22, [#allocation9], %s1483_s30, %s1483_s30, %s1484_s9  }
  0x2f   :  { %s1420_s0 = scalar_lea.vmem %s73_s24, 1024  ;;  %p1425_p7 = scmp.lt.s32.totalorder %s73_s24, %s73_s24 }
  0x30   :  { %p1421_p6 = scmp.ne.s32.totalorder %s73_s24, %s1420_s0  ;;  %p1426_p8 = scmp.lt.s32.totalorder %s1420_s0, %s1420_s0 }
  0x32   :  { %p1427_p9 = por %p1426_p8, %p1425_p7 }
  0x34   :  { %p1428_p10 = pnand %p1427_p9, %p1421_p6 }
  0x36   :  { %1431 = shalt.err (!%p1428_p10)
}
  0x37   :  { %78 = dma.hbm_to_vmem [thread:$0]  %s1769_s5, 1024, %s73_s24, [#allocation12], %s1483_s30, %s1483_s30, %s1484_s9  }
  0x38   :  { %1472 = dma.done.wait [#allocation6], 128  }
  0x39   :  { %1473 = vsyncadd [#allocation6], 4294967168 }
  0x3a   :  { %1474 = dma.done.wait [#allocation9], 1536  }
  0x3b   :  { %1475 = vsyncadd [#allocation9], 4294965760 }
  0x3c   :  { %1476 = dma.done.wait [#allocation12], 2048  }
  0x3d   :  { %1477 = vsyncadd [#allocation12], 4294965248  ;;  %v1489_v0 = vmov 0.0   ;;  %vm1490_vm0 = vmmov 0   ;;  %v1284_v1 = vld [vmem:[#allocation10 + $0x38] sm:$0xff]   ;;  %v1286_v3 = vld [vmem:[#allocation10 + $0x30] sm:$0xff]  }
  0x3e   :  { %1087 = vmatprep.subr.bf16.mxu1 %v1489_v0  ;;  %1103 = vmatprep.mubr.msk.bf16.mxu1 %vm1490_vm0, %v1489_v0  ;;  %v1570_v2 = vld [vmem:[#allocation11 + $0x38] sm:$0xff]   ;;  %v1573_v4 = vld [vmem:[#allocation11 + $0x30] sm:$0xff]   ;;  %v1288_v5 = vld [vmem:[#allocation10 + $0x28] sm:$0xff]  }
  0x3f   :  { %1063 = vmatprep.subr.bf16.mxu0 %v1284_v1  ;;  %1088 = vmatpush3.bf16.msra.mxu1 %v1570_v2  ;;  %v1577_v6 = vld [vmem:[#allocation11 + $0x28] sm:$0xff]   ;;  %v1290_v7 = vld [vmem:[#allocation10 + $0x20] sm:$0xff]   ;;  %v1292_v9 = vld [vmem:[#allocation10 + $0x18] sm:$0xff]  }
  0x40   :  { %1064 = vmatpush3.bf16.msra.mxu0 %v1284_v1  ;;  %1089 = vmatprep.subr.bf16.mxu1 %v1489_v0  ;;  %v1581_v8 = vld [vmem:[#allocation11 + $0x20] sm:$0xff]   ;;  %v1584_v10 = vld [vmem:[#allocation11 + $0x18] sm:$0xff]   ;;  %v1294_v11 = vld [vmem:[#allocation10 + $0x10] sm:$0xff]  }
  0x41   :  { %1065 = vmatprep.subr.bf16.mxu0 %v1286_v3  ;;  %v1300_v12 = vld [vmem:[#allocation8] sm:$0xff]   ;;  %v1588_v13 = vld [vmem:[#allocation11 + $0x10] sm:$0xff]   ;;  %v1296_v14 = vld [vmem:[#allocation10 + $0x8] sm:$0xff]  }
  0x42   :  { %1079 = vmatprep.mubr.bf16.mxu0 %v1300_v12  ;;  %v1592_v15 = vld [vmem:[#allocation11 + $0x8] sm:$0xff]   ;;  %v1298_v16 = vld [vmem:[#allocation10] sm:$0xff]   ;;  %v101_v18 = vld [vmem:[#allocation5] sm:$0xff] }
  0x43   :  { %1090 = vmatpush3.bf16.msra.mxu1 %v1573_v4  ;;  %v1597_v17 = vld [vmem:[#allocation11] sm:$0xff]   ;;  %v297_v19 = vpack.c.bf16 %v101_v18, %v101_v18  ;;  %v1301_v20 = vld [vmem:[#allocation8 + $0x8] sm:$0xff]   ;;  %v1302_v21 = vld [vmem:[#allocation8 + $0x10] sm:$0xff]  }
  0x44   :  { %1066 = vmatpush3.bf16.msra.mxu0 %v1286_v3  ;;  %1091 = vmatprep.subr.bf16.mxu1 %v1489_v0  ;;  %v1303_v22 = vld [vmem:[#allocation8 + $0x18] sm:$0xff]  }
  0x45   :  { %1067 = vmatprep.subr.bf16.mxu0 %v1288_v5  ;;  %v1644_v25 = vld [vmem:[%s1768_s4] ss:$0 sm:$0xff] }
  0x47   :  { %1092 = vmatpush3.bf16.msra.mxu1 %v1577_v6 }
  0x48   :  { %1068 = vmatpush3.bf16.msra.mxu0 %v1288_v5  ;;  %1093 = vmatprep.subr.bf16.mxu1 %v1489_v0 }
  0x49   :  { %1069 = vmatprep.subr.bf16.mxu0 %v1290_v7 }
  0x4b   :  { %1094 = vmatpush3.bf16.msra.mxu1 %v1581_v8 }
  0x4c   :  { %1070 = vmatpush3.bf16.msra.mxu0 %v1290_v7  ;;  %1095 = vmatprep.subr.bf16.mxu1 %v1489_v0 }
  0x4d   :  { %1071 = vmatprep.subr.bf16.mxu0 %v1292_v9 }
  0x4f   :  { %1096 = vmatpush3.bf16.msra.mxu1 %v1584_v10 }
  0x50   :  { %1072 = vmatpush3.bf16.msra.mxu0 %v1292_v9  ;;  %1097 = vmatprep.subr.bf16.mxu1 %v1489_v0 }
  0x51   :  { %1073 = vmatprep.subr.bf16.mxu0 %v1294_v11 }
  0x53   :  { %1098 = vmatpush3.bf16.msra.mxu1 %v1588_v13 }
  0x54   :  { %1074 = vmatpush3.bf16.msra.mxu0 %v1294_v11  ;;  %1099 = vmatprep.subr.bf16.mxu1 %v1489_v0 }
  0x55   :  { %1075 = vmatprep.subr.bf16.mxu0 %v1296_v14 }
  0x57   :  { %1100 = vmatpush3.bf16.msra.mxu1 %v1592_v15 }
  0x58   :  { %1076 = vmatpush3.bf16.msra.mxu0 %v1296_v14  ;;  %1101 = vmatprep.subr.bf16.mxu1 %v1489_v0 }
  0x59   :  { %1077 = vmatprep.subr.bf16.mxu0 %v1298_v16 }
  0x5b   :  { %1102 = vmatpush3.bf16.msra.mxu1 %v1597_v17 }
  0x5c   :  { %1078 = vmatpush3.bf16.msra.mxu0 %v1298_v16  ;;  %1127 = vmatprep.subr.bf16.mxu1 %v1489_v0 }
  0x5d   :  { %1107 = vmatprep.subr.bf16.mxu0 %v1489_v0 }
  0x5e   :  { %1104 = vmatmul.mubr.bf16.vlgmr.msra.gmra.mxu1 %v297_v19 }
  0x5f   :  { %1080 = vmatmul.mubr.bf16.vlgmr.msra.gmra.mxu0 %v1301_v20  ;;  %1128 = vmatpush3.bf16.msra.mxu1 %v1570_v2  ;;  %v1306_v20 = vld [vmem:[#allocation13 + $0x30] sm:$0xff]  }
  0x60   :  { %1108 = vmatpush3.bf16.msra.mxu0 %v1570_v2  ;;  %1129 = vmatprep.subr.bf16.mxu1 %v1489_v0 }
  0x61   :  { %1109 = vmatprep.subr.bf16.mxu0 %v1489_v0  ;;  %1143 = vmatprep.mubr.msk.bf16.mxu1 %vm1490_vm0, %v1489_v0 }
  0x62   :  { %1083 = vmatprep.mubr.bf16.mxu0 %v1302_v21 }
  0x63   :  { %1130 = vmatpush3.bf16.msra.mxu1 %v1573_v4 }
  0x64   :  { %1110 = vmatpush3.bf16.msra.mxu0 %v1573_v4  ;;  %1131 = vmatprep.subr.bf16.mxu1 %v1489_v0 }
  0x65   :  { %1111 = vmatprep.subr.bf16.mxu0 %v1489_v0 }
  0x67   :  { %1132 = vmatpush3.bf16.msra.mxu1 %v1577_v6  ;;  %1084 = vmatmul.mubr.bf16.gmra.mxu0 %v1303_v22  ;;  %v1310_v22 = vld [vmem:[#allocation13 + $0x10] sm:$0xff]  }
  0x68   :  { %1112 = vmatpush3.bf16.msra.mxu0 %v1577_v6  ;;  %1133 = vmatprep.subr.bf16.mxu1 %v1489_v0 }
  0x69   :  { %1113 = vmatprep.subr.bf16.mxu0 %v1489_v0  ;;  %1123 = vmatprep.mubr.msk.bf16.mxu0 %vm1490_vm0, %v1489_v0 }
  0x6b   :  { %1134 = vmatpush3.bf16.msra.mxu1 %v1581_v8 }
  0x6c   :  { %1114 = vmatpush3.bf16.msra.mxu0 %v1581_v8  ;;  %1135 = vmatprep.subr.bf16.mxu1 %v1489_v0 }
  0x6d   :  { %1115 = vmatprep.subr.bf16.mxu0 %v1489_v0 }
  0x6f   :  { %1136 = vmatpush3.bf16.msra.mxu1 %v1584_v10 }
  0x70   :  { %1116 = vmatpush3.bf16.msra.mxu0 %v1584_v10  ;;  %1137 = vmatprep.subr.bf16.mxu1 %v1489_v0 }
  0x71   :  { %1117 = vmatprep.subr.bf16.mxu0 %v1489_v0 }
  0x73   :  { %1138 = vmatpush3.bf16.msra.mxu1 %v1588_v13 }
  0x74   :  { %1118 = vmatpush3.bf16.msra.mxu0 %v1588_v13  ;;  %1139 = vmatprep.subr.bf16.mxu1 %v1489_v0 }
  0x75   :  { %1119 = vmatprep.subr.bf16.mxu0 %v1489_v0 }
  0x77   :  { %1140 = vmatpush3.bf16.msra.mxu1 %v1592_v15 }
  0x78   :  { %1120 = vmatpush3.bf16.msra.mxu0 %v1592_v15  ;;  %1141 = vmatprep.subr.bf16.mxu1 %v1489_v0 }
  0x79   :  { %1121 = vmatprep.subr.bf16.mxu0 %v1489_v0 }
  0x7b   :  { %1142 = vmatpush3.bf16.msra.mxu1 %v1597_v17 }
  0x7c   :  { %1122 = vmatpush3.bf16.msra.mxu0 %v1597_v17  ;;  %1167 = vmatprep.subr.bf16.mxu1 %v1489_v0 }
  0x7d   :  { %1147 = vmatprep.subr.bf16.mxu0 %v1489_v0 }
 0x11e   :  { %v380_v23 = vpop.f32.mrf.mxu1 }
 0x11f   :  { %v1639_v24 = vpop.f32.mrf.mxu0 }
 0x120   :  { %v1105_v26 = vpop.f32.mrf.mxu1  ;;  %v249_v48 = vadd.f32 %v1639_v24, %v1644_v25  ;;  %v1312_v24 = vld [vmem:[#allocation13] sm:$0xff]  }
 0x121   :  { %v240_v27 = vpop.f32.mrf.mxu0 }
 0x122   :  { %v241_v28 = vadd.f32 %v1644_v25, %v240_v27  ;;  %v383_v29 = vpop.f32.mrf.mxu1 }
 0x123   :  { %v1082_v34 = vpop.f32.mrf.mxu0 }
 0x124   :  { %v386_v30 = vadd.f32 %v380_v23, %v241_v28  ;;  %v1106_v31 = vpop.f32.mrf.mxu1  ;;  %v252_v56 = vadd.f32 %v1082_v34, %v1644_v25  ;;  %v1311_v23 = vld [vmem:[#allocation13 + $0x8] sm:$0xff]  }
 0x125   :  { %v243_v35 = vpop.f32.mrf.mxu0 }
 0x126   :  { %1316 = vtanh.f32 %v386_v30  ;;  %v244_v40 = vadd.f32 %v1644_v25, %v243_v35 }
 0x127   :  { %v1665_v36 = vpop.f32.mrf.mxu0 }
 0x128   :  { %v265_v28 = vadd.f32 %v1665_v36, %v1644_v25 }
 0x129   :  { %v1667_v37 = vpop.f32.mrf.mxu0 }
 0x12a   :  { %v257_v1 = vadd.f32 %v1644_v25, %v1667_v37  ;;  %v954_v37 = vld [vmem:[%s1770_s6] ss:$0 sm:$0xff]  ;;  %s1491_s6 = smov [#allocation15]  }
 0x12b   :  { %v1669_v38 = vpop.f32.mrf.mxu0  ;;  %s918_s30 = sshll.u32 %s1491_s6, 4  ;;  %s919_s30 = int_to_ptr.vmem [resolvable:$true] %s918_s30 }
 0x12c   :  { %s1432_s9 = scalar_lea.vmem %s919_s30, 128  ;;  %p1437_p12 = scmp.lt.s32.totalorder %s919_s30, %s919_s30 }
 0x12d   :  { %v1671_v39 = vpop.f32.mrf.mxu0  ;;  %p1433_p11 = scmp.ne.s32.totalorder %s919_s30, %s1432_s9  ;;  %p1438_p13 = scmp.lt.s32.totalorder %s1432_s9, %s1432_s9 }
 0x12f   :  { %p1439_p0 = por %p1438_p13, %p1437_p12 }
 0x131   :  { %p1440_p1 = pnand %p1439_p0, %p1433_p11 }
 0x133   :  { %v1317_v32 = vpop.eup %1316 }
 0x134   :  { %v388_v33 = vpack.c.bf16 %v1317_v32, %v1317_v32 }
 0x136   :  { %389 = vst [vmem:[#allocation3] sm:$0xf] %v388_v33  ;;  %1124 = vmatmul.mubr.bf16.vlgmr.msra.gmra.mxu0 %v388_v33 }
 0x137   :  { %1148 = vmatpush3.bf16.msra.mxu0 %v1570_v2  ;;  %1163 = vmatprep.mubr.msk.bf16.mxu0 %vm1490_vm0, %v1489_v0 }
 0x138   :  { %1149 = vmatprep.subr.bf16.mxu0 %v1489_v0 }
 0x13b   :  { %1150 = vmatpush3.bf16.msra.mxu0 %v1573_v4 }
 0x13c   :  { %1151 = vmatprep.subr.bf16.mxu0 %v1489_v0 }
 0x13f   :  { %1152 = vmatpush3.bf16.msra.mxu0 %v1577_v6 }
 0x140   :  { %1153 = vmatprep.subr.bf16.mxu0 %v1489_v0 }
 0x143   :  { %1154 = vmatpush3.bf16.msra.mxu0 %v1581_v8 }
 0x144   :  { %1155 = vmatprep.subr.bf16.mxu0 %v1489_v0 }
 0x147   :  { %1156 = vmatpush3.bf16.msra.mxu0 %v1584_v10 }
 0x148   :  { %1157 = vmatprep.subr.bf16.mxu0 %v1489_v0 }
 0x14b   :  { %1158 = vmatpush3.bf16.msra.mxu0 %v1588_v13 }
 0x14c   :  { %1159 = vmatprep.subr.bf16.mxu0 %v1489_v0 }
 0x14f   :  { %1160 = vmatpush3.bf16.msra.mxu0 %v1592_v15 }
 0x150   :  { %1161 = vmatprep.subr.bf16.mxu0 %v1489_v0 }
 0x153   :  { %1162 = vmatpush3.bf16.msra.mxu0 %v1597_v17 }
 0x154   :  { %1187 = vmatprep.subr.bf16.mxu0 %v1489_v0 }
 0x1f6   :  { %v426_v41 = vpop.f32.mrf.mxu0 }
 0x1f7   :  { %v432_v42 = vadd.f32 %v426_v41, %v244_v40 }
 0x1f8   :  { %v1125_v43 = vpop.f32.mrf.mxu0 }
 0x1f9   :  { %1318 = vtanh.f32 %v432_v42 }
 0x1fa   :  { %v429_v44 = vpop.f32.mrf.mxu0 }
 0x1fc   :  { %v1126_v45 = vpop.f32.mrf.mxu0 }
 0x206   :  { %v1319_v46 = vpop.eup %1318 }
 0x207   :  { %v434_v47 = vpack.c.bf16 %v1319_v46, %v1319_v46  ;;  %v268_v46 = vadd.f32 %v1669_v38, %v1644_v25 }
 0x209   :  { %436 = vst [vmem:[#allocation3 + $0x4] sm:$0xf] %v434_v47  ;;  %1144 = vmatmul.mubr.bf16.vlgmr.msra.gmra.mxu1 %v434_v47 }
 0x20a   :  { %1168 = vmatpush3.bf16.msra.mxu1 %v1570_v2  ;;  %1183 = vmatprep.mubr.msk.bf16.mxu1 %vm1490_vm0, %v1489_v0 }
 0x20b   :  { %1169 = vmatprep.subr.bf16.mxu1 %v1489_v0 }
 0x20e   :  { %1170 = vmatpush3.bf16.msra.mxu1 %v1573_v4 }
 0x20f   :  { %1171 = vmatprep.subr.bf16.mxu1 %v1489_v0 }
 0x210   :  { %v1305_v21 = vld [vmem:[#allocation3] sm:$0xff]  }
 0x212   :  { %1172 = vmatpush3.bf16.msra.mxu1 %v1577_v6 }
 0x213   :  { %1173 = vmatprep.subr.bf16.mxu1 %v1489_v0 }
 0x216   :  { %1174 = vmatpush3.bf16.msra.mxu1 %v1581_v8 }
 0x217   :  { %1175 = vmatprep.subr.bf16.mxu1 %v1489_v0 }
 0x21a   :  { %1176 = vmatpush3.bf16.msra.mxu1 %v1584_v10 }
 0x21b   :  { %1177 = vmatprep.subr.bf16.mxu1 %v1489_v0 }
 0x21e   :  { %1178 = vmatpush3.bf16.msra.mxu1 %v1588_v13 }
 0x21f   :  { %1179 = vmatprep.subr.bf16.mxu1 %v1489_v0 }
 0x222   :  { %1180 = vmatpush3.bf16.msra.mxu1 %v1592_v15 }
 0x223   :  { %1181 = vmatprep.subr.bf16.mxu1 %v1489_v0 }
 0x226   :  { %1182 = vmatpush3.bf16.msra.mxu1 %v1597_v17 }
 0x227   :  { %1207 = vmatprep.subr.bf16.mxu1 %v1489_v0 }
 0x2c9   :  { %v473_v49 = vpop.f32.mrf.mxu1 }
 0x2ca   :  { %v479_v50 = vadd.f32 %v473_v49, %v249_v48 }
 0x2cb   :  { %v1145_v51 = vpop.f32.mrf.mxu1 }
 0x2cc   :  { %1320 = vtanh.f32 %v479_v50 }
 0x2cd   :  { %v476_v52 = vpop.f32.mrf.mxu1 }
 0x2cf   :  { %v1146_v53 = vpop.f32.mrf.mxu1 }
 0x2d9   :  { %v1321_v54 = vpop.eup %1320 }
 0x2da   :  { %v481_v55 = vpack.c.bf16 %v1321_v54, %v1321_v54 }
 0x2dc   :  { %483 = vst [vmem:[#allocation3 + $0x8] sm:$0xf] %v481_v55  ;;  %1164 = vmatmul.mubr.bf16.vlgmr.msra.gmra.mxu0 %v481_v55 }
 0x2dd   :  { %1188 = vmatpush3.bf16.msra.mxu0 %v1570_v2  ;;  %1203 = vmatprep.mubr.msk.bf16.mxu0 %vm1490_vm0, %v1489_v0 }
 0x2de   :  { %1189 = vmatprep.subr.bf16.mxu0 %v1489_v0 }
 0x2e1   :  { %1190 = vmatpush3.bf16.msra.mxu0 %v1573_v4 }
 0x2e2   :  { %1191 = vmatprep.subr.bf16.mxu0 %v1489_v0 }
 0x2e5   :  { %1192 = vmatpush3.bf16.msra.mxu0 %v1577_v6 }
 0x2e6   :  { %1193 = vmatprep.subr.bf16.mxu0 %v1489_v0 }
 0x2e9   :  { %1194 = vmatpush3.bf16.msra.mxu0 %v1581_v8 }
 0x2ea   :  { %1195 = vmatprep.subr.bf16.mxu0 %v1489_v0 }
 0x2ed   :  { %1196 = vmatpush3.bf16.msra.mxu0 %v1584_v10 }
 0x2ee   :  { %1197 = vmatprep.subr.bf16.mxu0 %v1489_v0 }
 0x2f1   :  { %1198 = vmatpush3.bf16.msra.mxu0 %v1588_v13 }
 0x2f2   :  { %1199 = vmatprep.subr.bf16.mxu0 %v1489_v0 }
 0x2f5   :  { %1200 = vmatpush3.bf16.msra.mxu0 %v1592_v15 }
 0x2f6   :  { %1201 = vmatprep.subr.bf16.mxu0 %v1489_v0 }
 0x2f9   :  { %1202 = vmatpush3.bf16.msra.mxu0 %v1597_v17 }
 0x2fa   :  { %1227 = vmatprep.subr.bf16.mxu0 %v1489_v0 }
 0x39c   :  { %v520_v57 = vpop.f32.mrf.mxu0 }
 0x39d   :  { %v526_v58 = vadd.f32 %v520_v57, %v252_v56 }
 0x39e   :  { %v1165_v59 = vpop.f32.mrf.mxu0 }
 0x39f   :  { %1322 = vtanh.f32 %v526_v58 }
 0x3a0   :  { %v523_v60 = vpop.f32.mrf.mxu0 }
 0x3a2   :  { %v1166_v61 = vpop.f32.mrf.mxu0 }
 0x3ac   :  { %v1323_v62 = vpop.eup %1322 }
 0x3ad   :  { %v528_v63 = vpack.c.bf16 %v1323_v62, %v1323_v62 }
 0x3af   :  { %530 = vst [vmem:[#allocation3 + $0xc] sm:$0xf] %v528_v63  ;;  %1184 = vmatmul.mubr.bf16.vlgmr.msra.gmra.mxu1 %v528_v63 }
 0x3b0   :  { %1208 = vmatpush3.bf16.msra.mxu1 %v1570_v2  ;;  %1223 = vmatprep.mubr.msk.bf16.mxu1 %vm1490_vm0, %v1489_v0 }
 0x3b1   :  { %1209 = vmatprep.subr.bf16.mxu1 %v1489_v0 }
 0x3b4   :  { %1210 = vmatpush3.bf16.msra.mxu1 %v1573_v4 }
 0x3b5   :  { %1211 = vmatprep.subr.bf16.mxu1 %v1489_v0 }
 0x3b6   :  { %v1313_v26 = vld [vmem:[#allocation3 + $0x8] sm:$0xff]  }
 0x3b8   :  { %1212 = vmatpush3.bf16.msra.mxu1 %v1577_v6 }
 0x3b9   :  { %1213 = vmatprep.subr.bf16.mxu1 %v1489_v0 }
 0x3bc   :  { %1214 = vmatpush3.bf16.msra.mxu1 %v1581_v8 }
 0x3bd   :  { %1215 = vmatprep.subr.bf16.mxu1 %v1489_v0 }
 0x3c0   :  { %1216 = vmatpush3.bf16.msra.mxu1 %v1584_v10 }
 0x3c1   :  { %1217 = vmatprep.subr.bf16.mxu1 %v1489_v0 }
 0x3c4   :  { %1218 = vmatpush3.bf16.msra.mxu1 %v1588_v13 }
 0x3c5   :  { %1219 = vmatprep.subr.bf16.mxu1 %v1489_v0 }
 0x3c8   :  { %1220 = vmatpush3.bf16.msra.mxu1 %v1592_v15 }
 0x3c9   :  { %1221 = vmatprep.subr.bf16.mxu1 %v1489_v0 }
 0x3cc   :  { %1222 = vmatpush3.bf16.msra.mxu1 %v1597_v17 }
 0x46f   :  { %v567_v3 = vpop.f32.mrf.mxu1 }
 0x470   :  { %v573_v5 = vadd.f32 %v567_v3, %v257_v1 }
 0x471   :  { %v1185_v7 = vpop.f32.mrf.mxu1 }
 0x472   :  { %1324 = vtanh.f32 %v573_v5 }
 0x473   :  { %v570_v9 = vpop.f32.mrf.mxu1 }
 0x475   :  { %v1186_v11 = vpop.f32.mrf.mxu1 }
 0x47f   :  { %v1325_v12 = vpop.eup %1324 }
 0x480   :  { %v575_v14 = vpack.c.bf16 %v1325_v12, %v1325_v12 }
 0x482   :  { %577 = vst [vmem:[#allocation3 + $0x10] sm:$0xf] %v575_v14  ;;  %1204 = vmatmul.mubr.bf16.vlgmr.msra.gmra.mxu0 %v575_v14 }
 0x483   :  { %1228 = vmatpush3.bf16.msra.mxu0 %v1570_v2  ;;  %1243 = vmatprep.mubr.msk.bf16.mxu0 %vm1490_vm0, %v1489_v0  ;;  %v1304_v2 = vld [vmem:[#allocation13 + $0x38] sm:$0xff]  }
 0x484   :  { %1229 = vmatprep.subr.bf16.mxu0 %v1489_v0  ;;  %1247 = vmatprep.subr.bf16.mxu1 %v1304_v2 }
 0x487   :  { %1230 = vmatpush3.bf16.msra.mxu0 %v1573_v4  ;;  %v260_v4 = vadd.f32 %v1644_v25, %v1671_v39 }
 0x488   :  { %1231 = vmatprep.subr.bf16.mxu0 %v1489_v0 }
 0x48b   :  { %1232 = vmatpush3.bf16.msra.mxu0 %v1577_v6 }
 0x48c   :  { %1233 = vmatprep.subr.bf16.mxu0 %v1489_v0 }
 0x48f   :  { %1234 = vmatpush3.bf16.msra.mxu0 %v1581_v8 }
 0x490   :  { %1235 = vmatprep.subr.bf16.mxu0 %v1489_v0 }
 0x493   :  { %1236 = vmatpush3.bf16.msra.mxu0 %v1584_v10 }
 0x494   :  { %1237 = vmatprep.subr.bf16.mxu0 %v1489_v0 }
 0x497   :  { %1238 = vmatpush3.bf16.msra.mxu0 %v1588_v13 }
 0x498   :  { %1239 = vmatprep.subr.bf16.mxu0 %v1489_v0 }
 0x49b   :  { %1240 = vmatpush3.bf16.msra.mxu0 %v1592_v15  ;;  %v1308_v15 = vld [vmem:[#allocation13 + $0x20] sm:$0xff]  }
 0x49c   :  { %1241 = vmatprep.subr.bf16.mxu0 %v1489_v0  ;;  %v1307_v0 = vld [vmem:[#allocation13 + $0x28] sm:$0xff]  }
 0x49f   :  { %1242 = vmatpush3.bf16.msra.mxu0 %v1597_v17  ;;  %v1309_v17 = vld [vmem:[#allocation13 + $0x18] sm:$0xff]  }
 0x542   :  { %v614_v6 = vpop.f32.mrf.mxu0 }
 0x543   :  { %v620_v8 = vadd.f32 %v614_v6, %v260_v4 }
 0x544   :  { %v1205_v10 = vpop.f32.mrf.mxu0 }
 0x545   :  { %1326 = vtanh.f32 %v620_v8 }
 0x546   :  { %v617_v16 = vpop.f32.mrf.mxu0 }
 0x548   :  { %v1206_v18 = vpop.f32.mrf.mxu0 }
 0x552   :  { %v1327_v13 = vpop.eup %1326 }
 0x553   :  { %v622_v19 = vpack.c.bf16 %v1327_v13, %v1327_v13 }
 0x555   :  { %624 = vst [vmem:[#allocation3 + $0x14] sm:$0xf] %v622_v19  ;;  %1224 = vmatmul.mubr.bf16.vlgmr.msra.gmra.mxu1 %v622_v19 }
 0x556   :  { %1248 = vmatpush3.bf16.msra.mxu1 %v1304_v2  ;;  %1263 = vmatprep.mubr.bf16.mxu1 %v1305_v21 }
 0x557   :  { %1249 = vmatprep.subr.bf16.mxu1 %v1306_v20 }
 0x55a   :  { %1250 = vmatpush3.bf16.msra.mxu1 %v1306_v20 }
 0x55b   :  { %1251 = vmatprep.subr.bf16.mxu1 %v1307_v0 }
 0x55c   :  { %v1314_v27 = vld [vmem:[#allocation3 + $0x10] sm:$0xff]  }
 0x55e   :  { %1252 = vmatpush3.bf16.msra.mxu1 %v1307_v0 }
 0x55f   :  { %1253 = vmatprep.subr.bf16.mxu1 %v1308_v15 }
 0x562   :  { %1254 = vmatpush3.bf16.msra.mxu1 %v1308_v15 }
 0x563   :  { %1255 = vmatprep.subr.bf16.mxu1 %v1309_v17 }
 0x566   :  { %1256 = vmatpush3.bf16.msra.mxu1 %v1309_v17 }
 0x567   :  { %1257 = vmatprep.subr.bf16.mxu1 %v1310_v22 }
 0x56a   :  { %1258 = vmatpush3.bf16.msra.mxu1 %v1310_v22 }
 0x56b   :  { %1259 = vmatprep.subr.bf16.mxu1 %v1311_v23 }
 0x56e   :  { %1260 = vmatpush3.bf16.msra.mxu1 %v1311_v23 }
 0x56f   :  { %1261 = vmatprep.subr.bf16.mxu1 %v1312_v24 }
 0x572   :  { %1262 = vmatpush3.bf16.msra.mxu1 %v1312_v24 }
 0x575   :  { %1264 = vmatmul.mubr.bf16.vlgmr.msra.gmra.mxu1 %v1313_v26 }
 0x576   :  { %1267 = vmatprep.mubr.bf16.mxu1 %v1314_v27 }
 0x615   :  { %v661_v29 = vpop.f32.mrf.mxu1 }
 0x616   :  { %v667_v30 = vadd.f32 %v661_v29, %v265_v28 }
 0x617   :  { %v1225_v31 = vpop.f32.mrf.mxu1 }
 0x618   :  { %1328 = vtanh.f32 %v667_v30 }
 0x619   :  { %v664_v32 = vpop.f32.mrf.mxu1 }
 0x61b   :  { %v1226_v33 = vpop.f32.mrf.mxu1 }
 0x625   :  { %v1329_v34 = vpop.eup %1328 }
 0x626   :  { %v669_v35 = vpack.c.bf16 %v1329_v34, %v1329_v34 }
 0x628   :  { %671 = vst [vmem:[#allocation3 + $0x18] sm:$0xf] %v669_v35  ;;  %1244 = vmatmul.mubr.bf16.vlgmr.msra.gmra.mxu0 %v669_v35 }
 0x635   :  { %v1265_v39 = vpop.f32.mrf.mxu1 }
 0x636   :  { %v866_v40 = vadd.f32 %v1265_v39, %v954_v37 }
 0x637   :  { %v857_v41 = vpop.f32.mrf.mxu1 }
 0x638   :  { %890 = vst [vmem:[#allocation14 + $0x10] sm:$0xff] %v866_v40  ;;  %v858_v42 = vadd.f32 %v954_v37, %v857_v41 }
 0x639   :  { %v1266_v36 = vpop.f32.mrf.mxu1 }
 0x63a   :  { %888 = vst [vmem:[#allocation14] sm:$0xff] %v858_v42  ;;  %v869_v43 = vadd.f32 %v1266_v36, %v954_v37 }
 0x63b   :  { %v860_v44 = vpop.f32.mrf.mxu1 }
 0x63c   :  { %891 = vst [vmem:[#allocation14 + $0x18] sm:$0xff] %v869_v43  ;;  %v861_v45 = vadd.f32 %v954_v37, %v860_v44 }
 0x63e   :  { %889 = vst [vmem:[#allocation14 + $0x8] sm:$0xff] %v861_v45 }
 0x6e8   :  { %v708_v47 = vpop.f32.mrf.mxu0 }
 0x6e9   :  { %v714_v48 = vadd.f32 %v708_v47, %v268_v46 }
 0x6ea   :  { %v1245_v49 = vpop.f32.mrf.mxu0 }
 0x6eb   :  { %1330 = vtanh.f32 %v714_v48 }
 0x6ec   :  { %v711_v50 = vpop.f32.mrf.mxu0 }
 0x6ee   :  { %v1246_v51 = vpop.f32.mrf.mxu0 }
 0x6f8   :  { %v1331_v52 = vpop.eup %1330 }
 0x6f9   :  { %v716_v53 = vpack.c.bf16 %v1331_v52, %v1331_v52  ;;  %899 = vst [vmem:[#allocation15] sm:$0xff] %v1331_v52 }
 0x6fb   :  { %718 = vst [vmem:[#allocation3 + $0x1c] sm:$0xf] %v716_v53 }
 0x702   :  { %v1315_v54 = vld [vmem:[#allocation3 + $0x18] sm:$0xff]  }
 0x703   :  { %1268 = vmatmul.mubr.bf16.gmra.mxu1 %v1315_v54 }
 0x704   :  { %1443 = shalt.err (!%p1440_p1)
}
 0x705   :  { %921 = dma.vmem_to_hbm [thread:$0]  %s919_s30, 128, %s1772_s8, [#allocation16]  }
 0x706   :  { %s1492_s12 = smov [#allocation14]  }
 0x707   :  { %s905_s13 = sshll.u32 %s1492_s12, 4  ;;  %s906_s13 = int_to_ptr.vmem [resolvable:$true] %s905_s13 }
 0x708   :  { %s1452_s14 = scalar_lea.vmem %s906_s13, 1024  ;;  %p1457_p3 = scmp.lt.s32.totalorder %s906_s13, %s906_s13 }
 0x709   :  { %p1453_p2 = scmp.ne.s32.totalorder %s906_s13, %s1452_s14  ;;  %p1458_p4 = scmp.lt.s32.totalorder %s1452_s14, %s1452_s14 }
 0x70b   :  { %p1459_p5 = por %p1458_p4, %p1457_p3 }
 0x70d   :  { %p1460_p6 = pnand %p1459_p5, %p1453_p2 }
 0x7c3   :  { %v1269_v25 = vpop.f32.mrf.mxu1 }
 0x7c4   :  { %v882_v38 = vadd.f32 %v1269_v25, %v954_v37 }
 0x7c5   :  { %v873_v55 = vpop.f32.mrf.mxu1 }
 0x7c6   :  { %894 = vst [vmem:[#allocation14 + $0x30] sm:$0xff] %v882_v38  ;;  %v874_v56 = vadd.f32 %v954_v37, %v873_v55 }
 0x7c7   :  { %v1270_v57 = vpop.f32.mrf.mxu1 }
 0x7c8   :  { %892 = vst [vmem:[#allocation14 + $0x20] sm:$0xff] %v874_v56  ;;  %v885_v58 = vadd.f32 %v1270_v57, %v954_v37 }
 0x7c9   :  { %v876_v59 = vpop.f32.mrf.mxu1 }
 0x7ca   :  { %895 = vst [vmem:[#allocation14 + $0x38] sm:$0xff] %v885_v58  ;;  %v877_v60 = vadd.f32 %v954_v37, %v876_v59 }
 0x7cc   :  { %893 = vst [vmem:[#allocation14 + $0x28] sm:$0xff] %v877_v60 }
 0x7cd   :  { %1463 = shalt.err (!%p1460_p6)
}
 0x7ce   :  { %s1493_s8 = smov 128   ;;  %s1494_s15 = smov 8  }
 0x7cf   :  { %911 = dma.vmem_to_hbm [thread:$0]  %s906_s13, 1024, %s1771_s7, [#allocation7], %s1493_s8, %s1493_s8, %s1494_s15  }
 0x7d0   :  { %1478 = dma.done.wait [#allocation7], 1024  }
 0x7d1   :  { %1479 = vsyncadd [#allocation7], 4294966272 }
 0x7d2   :  { %1480 = dma.done.wait [#allocation16], 128  }
 0x7d3   :  { %1481 = vsyncadd [#allocation16], 4294967168 }
 0x7d4   :  { %928 = vsyncpa [#allocation6], 1 }
 0x7d5   :  { %929 = vsyncpa [#allocation9], 1 }
 0x7d6   :  { %930 = vsyncpa [#allocation12], 1 }
 0x7d7   :  { %931 = vsyncpa [#allocation7], 1 }
 0x7d8   :  { %932 = vsyncpa [#allocation16], 1 }

</bundles_post_ra>
